<compile_context>
chip_gen: v5e
topology: v5e:2x2
jax: 0.10.0
libtpu: 0.0.40
codegen_flags: <defaults>
</compile_context>

<pallas_src>
import functools
import math

import jax
import jax.numpy as jnp
from jax import lax
from jax.experimental import pallas as pl
from jax.experimental.pallas import tpu as pltpu


def attention_kernel(x_ref, wq_ref, wk_ref, wv_ref, bq_ref, bk_ref, bv_ref,
                     wo_ref, bo_ref, o_ref, acc_ref, *, bt, seq, hg,
                     approx_recip):
    g = pl.program_id(1)            # head-group index (reduction axis)
    ng = pl.num_programs(1)
    rows, dim = x_ref.shape         # rows = bt * seq
    cg = wq_ref.shape[1]            # hg * d columns for this head group
    d = cg // hg
    cdt = wq_ref.dtype              # compute dtype for MXU inputs (f32 or bf16)

    x = x_ref[...].astype(cdt)      # cast in-kernel (no wrapper pre-cast pass)

    # ---- Q/K/V projections for this head group (scale pre-folded into Wq/bq)
    q = jnp.dot(x, wq_ref[...], preferred_element_type=jnp.float32) + bq_ref[...]
    k = jnp.dot(x, wk_ref[...], preferred_element_type=jnp.float32) + bk_ref[...]
    v = jnp.dot(x, wv_ref[...], preferred_element_type=jnp.float32) + bv_ref[...]

    # ---- Per-head attention, batched over the bt batch tiles ---------------
    part = None
    for hh in range(hg):            # hg is small (1-2 typical; ==heads only when dim<128)
        lo = hh * d
        q3 = q[:, lo:lo + d].reshape(bt, seq, d).astype(cdt)
        k3 = k[:, lo:lo + d].reshape(bt, seq, d).astype(cdt)
        v3 = v[:, lo:lo + d].reshape(bt, seq, d).astype(cdt)

        # 'bqd,bkd->bqk' (no explicit k transpose)
        dots = lax.dot_general(q3, k3, (((2,), (2,)), ((0,), (0,))),
                               preferred_element_type=jnp.float32)
        dots = dots - jnp.max(dots, axis=-1, keepdims=True)     # f32 softmax
        e = jnp.exp(dots)                                       # EUP
        s = jnp.sum(e, axis=-1, keepdims=True)
        inv = pl.reciprocal(s, approx=True) if approx_recip else 1.0 / s

        # 'bqk,bkd->bqd' on unnormalized probs; normalize the (small) result
        ctx = lax.dot_general(e.astype(cdt), v3, (((2,), (1,)), ((0,), (0,))),
                              preferred_element_type=jnp.float32)
        ctx = (ctx * inv).reshape(rows, d).astype(cdt)

        # Output-projection partial for this head (sublane slice of Wo rows).
        p = jnp.dot(ctx, wo_ref[pl.ds(lo, d), :],
                    preferred_element_type=jnp.float32)
        part = p if part is None else part + p

    # ---- Accumulate across head groups into resident f32 scratch -----------
    @pl.when(g == 0)
    def _():
        acc_ref[...] = part + bo_ref[...]

    @pl.when(g > 0)
    def _():
        acc_ref[...] += part

    @pl.when(g == ng - 1)
    def _():
        o_ref[...] = acc_ref[...].astype(o_ref.dtype)   # eval-mode dropout = identity


def _pick_batch_block(B, n, align=8, target_rows=512):
    """Pick bt (batch elems per tile) and the (possibly padded) batch size.

    Rows per tile = bt*n must be `align`-aligned (16 for bf16 packing, 8 for
    f32); prefer the largest aligned divisor of B with rows <= target_rows
    that still leaves >=2 grid steps (megacore).  Never falls back to a
    full-batch block: if no aligned divisor exists, the batch is padded."""
    divs = [bt for bt in range(1, B + 1)
            if B % bt == 0 and (bt * n) % align == 0]
    if divs:
        under = [bt for bt in divs if bt * n <= target_rows]
        if under:
            multi = [bt for bt in under if B // bt >= 2]
            return (max(multi) if multi else max(under)), B
        return min(divs), B
    # No aligned divisor of B exists (e.g. odd n): pad the batch instead of
    # taking a giant full-batch block.
    g = math.gcd(n, align)
    bt = align // g
    b_pad = -(-B // bt) * bt
    return bt, b_pad


def _pick_head_group(heads, d):
    """Smallest head-group size hg dividing `heads` with hg*d lane-aligned
    (multiple of 128); falls back to all heads (block == full dim, legal)."""
    for hg in range(1, heads + 1):
        if heads % hg == 0 and (hg * d) % 128 == 0:
            return hg
    return heads


def attention(x, wqkv, bqkv, wo, bo, *, heads, compute_dtype=jnp.bfloat16,
              batch_block=None):
    """x: (B, n, dim). Returns (B, n, dim) in x.dtype (eval-mode forward)."""
    B, n, dim = x.shape
    assert dim % heads == 0, "dim must be divisible by heads"
    d = dim // heads
    scale = float(dim) ** (-0.5)            # PyTorch module scales by full dim
    cdt = jnp.dtype(compute_dtype) if compute_dtype is not None else x.dtype
    out_dtype = x.dtype

    align = 16 if cdt == jnp.dtype(jnp.bfloat16) else 8
    if batch_block is None:
        bt, b_pad = _pick_batch_block(B, n, align=align)
    else:
        bt, b_pad = batch_block, B
        assert B % bt == 0 and (bt * n) % 8 == 0

    hg = _pick_head_group(heads, d)
    ng = heads // hg
    cg = hg * d
    rows = bt * n
    grid = (b_pad // bt, ng)

    if b_pad != B:
        x = jnp.concatenate(
            [x, jnp.zeros((b_pad - B, n, dim), x.dtype)], axis=0)
    x2d = x.reshape(b_pad * n, dim)          # no dtype cast here (done in kernel)

    # One-time weight prep: head-major q/k/v column split, scale folded into q.
    wq = (wqkv[:, :dim] * scale).astype(cdt)
    wk = wqkv[:, dim:2 * dim].astype(cdt)
    wv = wqkv[:, 2 * dim:].astype(cdt)
    bq = (bqkv[:dim] * scale).reshape(1, dim).astype(jnp.float32)
    bk = bqkv[dim:2 * dim].reshape(1, dim).astype(jnp.float32)
    bv = bqkv[2 * dim:].reshape(1, dim).astype(jnp.float32)
    wo_c = wo.astype(cdt)
    bo2 = bo.reshape(1, dim).astype(jnp.float32)

    itemsize_c = jnp.dtype(cdt).itemsize
    itemsize_x = jnp.dtype(x.dtype).itemsize
    itemsize_o = jnp.dtype(out_dtype).itemsize

    flops = (2 * b_pad * n * dim * (3 * dim)          # qkv projection
             + 2 * 2 * b_pad * heads * n * n * d      # q@k^T and attn@v
             + 2 * b_pad * n * dim * dim)             # output projection
    transcendentals = b_pad * heads * n * n           # softmax exp
    bytes_accessed = (b_pad * n * dim * itemsize_x    # x (read once; resident per tile)
                      + 4 * dim * dim * itemsize_c * (b_pad // bt)   # weights per batch tile
                      + 4 * dim * 4                   # biases (f32)
                      + b_pad * n * dim * itemsize_o)  # out

    # VMEM budget for this tiling (double-buffered I/O, f32 intermediates).
    vmem_need = (2 * rows * dim * itemsize_x          # x tile
                 + 2 * rows * dim * itemsize_o        # out tile
                 + rows * dim * 4                     # f32 accumulator scratch
                 + 2 * (3 * dim * cg + cg * dim) * itemsize_c   # group weights
                 + 2 * (3 * cg + dim) * 4             # biases
                 + 3 * rows * cg * 4                  # q/k/v f32
                 + 3 * bt * n * n * 4                 # dots / e
                 + rows * dim * 4 + rows * cg * 4)    # part / ctx
    vmem_limit = int(min(64 * 1024 * 1024,
                         max(32 * 1024 * 1024, 2 * vmem_need)))

    kernel = functools.partial(
        attention_kernel, bt=bt, seq=n, hg=hg,
        approx_recip=(cdt == jnp.dtype(jnp.bfloat16)))

    out = pl.pallas_call(
        kernel,
        out_shape=jax.ShapeDtypeStruct((b_pad * n, dim), out_dtype),
        grid_spec=pltpu.PrefetchScalarGridSpec(
            num_scalar_prefetch=0,
            grid=grid,
            in_specs=[
                pl.BlockSpec((rows, dim), lambda i, g: (i, 0)),   # x rows tile
                pl.BlockSpec((dim, cg), lambda i, g: (0, g)),     # Wq (head group cols)
                pl.BlockSpec((dim, cg), lambda i, g: (0, g)),     # Wk
                pl.BlockSpec((dim, cg), lambda i, g: (0, g)),     # Wv
                pl.BlockSpec((1, cg), lambda i, g: (0, g)),       # bq (pre-scaled)
                pl.BlockSpec((1, cg), lambda i, g: (0, g)),       # bk
                pl.BlockSpec((1, cg), lambda i, g: (0, g)),       # bv
                pl.BlockSpec((cg, dim), lambda i, g: (g, 0)),     # Wo (head group rows)
                pl.BlockSpec((1, dim), lambda i, g: (0, 0)),      # bo
            ],
            out_specs=pl.BlockSpec((rows, dim), lambda i, g: (i, 0)),
            scratch_shapes=[pltpu.VMEM((rows, dim), jnp.float32)],
        ),
        compiler_params=pltpu.CompilerParams(
            dimension_semantics=("parallel", "arbitrary"),
            vmem_limit_bytes=vmem_limit),
        cost_estimate=pl.CostEstimate(
            flops=flops, transcendentals=transcendentals,
            bytes_accessed=bytes_accessed),
    )(x2d, wq, wk, wv, bq, bk, bv, wo_c, bo2)

    out = out.reshape(b_pad, n, dim)
    return out[:B] if b_pad != B else out


def init_params(key, dim, dtype=jnp.float32):
    """Mirrors the PyTorch init: xavier_uniform_ weights, zero biases.
    Weights stored as (in, out) = transpose of torch's (out, in)."""
    k1, k2 = jax.random.split(key)
    lim_qkv = math.sqrt(6.0 / (dim + 3 * dim))
    lim_o = math.sqrt(6.0 / (dim + dim))
    wqkv = jax.random.uniform(k1, (dim, 3 * dim), dtype, -lim_qkv, lim_qkv)
    bqkv = jnp.zeros((3 * dim,), dtype)
    wo = jax.random.uniform(k2, (dim, dim), dtype, -lim_o, lim_o)
    bo = jnp.zeros((dim,), dtype)
    return wqkv, bqkv, wo, bo


def attention_ref(x, wqkv, bqkv, wo, bo, heads):
    """Plain-JAX reference matching the PyTorch forward (mask=None, eval)."""
    B, n, dim = x.shape
    d = dim // heads
    scale = float(dim) ** (-0.5)
    qkv = x @ wqkv + bqkv                              # (B, n, 3*dim)
    qkv = qkv.reshape(B, n, 3, heads, d)
    q = jnp.transpose(qkv[:, :, 0], (0, 2, 1, 3))      # (B, h, n, d)
    k = jnp.transpose(qkv[:, :, 1], (0, 2, 1, 3))
    v = jnp.transpose(qkv[:, :, 2], (0, 2, 1, 3))
    dots = jnp.einsum('bhid,bhjd->bhij', q, k) * scale
    attn = jax.nn.softmax(dots, axis=-1)
    ctx = jnp.einsum('bhij,bhjd->bhid', attn, v)
    ctx = jnp.transpose(ctx, (0, 2, 1, 3)).reshape(B, n, dim)
    return ctx @ wo + bo


if __name__ == "__main__":
    key = jax.random.PRNGKey(0)
    kx, kp, kb1, kb2 = jax.random.split(key, 4)

    B, n, dim, heads = 2, 16, 64, 8
    x = jax.random.normal(kx, (B, n, dim), dtype=jnp.float32)
    wqkv, bqkv, wo, bo = init_params(kp, dim)
    # Non-zero biases so the bias path is actually exercised.
    bqkv = 0.02 * jax.random.normal(kb1, (3 * dim,), dtype=jnp.float32)
    bo = 0.02 * jax.random.normal(kb2, (dim,), dtype=jnp.float32)

    y_ref = attention_ref(x, wqkv, bqkv, wo, bo, heads)

    # f32 compute path (tight check vs the PyTorch eval-mode forward)
    y32 = attention(x, wqkv, bqkv, wo, bo, heads=heads,
                    compute_dtype=jnp.float32)
    y32 = jax.block_until_ready(y32)
    assert y32.shape == (B, n, dim)
    err32 = float(jnp.max(jnp.abs(y32 - y_ref)))
    assert err32 < 1e-3, err32

    # default bf16 compute path (f32 accumulation / bias / softmax)
    ybf = attention(x, wqkv, bqkv, wo, bo, heads=heads)
    ybf = jax.block_until_ready(ybf)
    assert ybf.shape == (B, n, dim)
    errbf = float(jnp.max(jnp.abs(ybf - y_ref)))
    assert errbf < 5e-2, errbf

    print("KERNEL_OK")
</pallas_src>

<mosaic_0001>
module attributes {stable_mosaic.version = 11 : i64} {
  func.func @attention_kernel(%arg0: i32, %arg1: i32, %arg2: memref<16x64xf32, #tpu.memory_space<vmem>>, %arg3: memref<64x64xf32, #tpu.memory_space<vmem>>, %arg4: memref<64x64xf32, #tpu.memory_space<vmem>>, %arg5: memref<64x64xf32, #tpu.memory_space<vmem>>, %arg6: memref<1x64xf32, #tpu.memory_space<vmem>>, %arg7: memref<1x64xf32, #tpu.memory_space<vmem>>, %arg8: memref<1x64xf32, #tpu.memory_space<vmem>>, %arg9: memref<64x64xf32, #tpu.memory_space<vmem>>, %arg10: memref<1x64xf32, #tpu.memory_space<vmem>>, %arg11: memref<16x64xf32, #tpu.memory_space<vmem>>, %arg12: memref<16x64xf32, #tpu.memory_space<vmem>>) attributes {dimension_semantics = [#tpu.dimension_semantics<parallel>, #tpu.dimension_semantics<arbitrary>], iteration_bounds = array<i64: 2, 1>, scalar_prefetch = 0 : i64, scratch_operands = 1 : i64, tpu.core_type = #tpu.core_type<tc>, window_params = [{transform_indices = @transform_0, window_bounds = array<i64: 16, 64>}, {transform_indices = @transform_1, window_bounds = array<i64: 64, 64>}, {transform_indices = @transform_2, window_bounds = array<i64: 64, 64>}, {transform_indices = @transform_3, window_bounds = array<i64: 64, 64>}, {transform_indices = @transform_4, window_bounds = array<i64: 1, 64>}, {transform_indices = @transform_5, window_bounds = array<i64: 1, 64>}, {transform_indices = @transform_6, window_bounds = array<i64: 1, 64>}, {transform_indices = @transform_7, window_bounds = array<i64: 64, 64>}, {pipeline_mode = #tpu.pipeline_mode<synchronous>, transform_indices = @transform_8, window_bounds = array<i64: 1, 64>}, {transform_indices = @transform_9, window_bounds = array<i64: 16, 64>}]} {
    %c0 = arith.constant 0 : index
    %c0_0 = arith.constant 0 : index
    %0 = vector.load %arg2[%c0, %c0_0] : memref<16x64xf32, #tpu.memory_space<vmem>>, vector<16x64xf32>
    %c0_1 = arith.constant 0 : index
    %c0_2 = arith.constant 0 : index
    %1 = vector.load %arg3[%c0_1, %c0_2] : memref<64x64xf32, #tpu.memory_space<vmem>>, vector<64x64xf32>
    %cst = arith.constant dense<0.000000e+00> : vector<16x64xf32>
    %2 = tpu.matmul %0, %1, %cst {dimension_numbers = #tpu.dot_dimension_numbers<[1], [0], [0], [1], [0, 0, 1, 1], [], []>} : vector<16x64xf32>, vector<64x64xf32>, vector<16x64xf32> -> vector<16x64xf32>
    %c0_3 = arith.constant 0 : index
    %c0_4 = arith.constant 0 : index
    %3 = vector.load %arg6[%c0_3, %c0_4] : memref<1x64xf32, #tpu.memory_space<vmem>>, vector<1x64xf32>
    %4 = vector.broadcast %3 : vector<1x64xf32> to vector<16x64xf32>
    %5 = arith.addf %2, %4 : vector<16x64xf32>
    %c0_5 = arith.constant 0 : index
    %c0_6 = arith.constant 0 : index
    %6 = vector.load %arg4[%c0_5, %c0_6] : memref<64x64xf32, #tpu.memory_space<vmem>>, vector<64x64xf32>
    %cst_7 = arith.constant dense<0.000000e+00> : vector<16x64xf32>
    %7 = tpu.matmul %0, %6, %cst_7 {dimension_numbers = #tpu.dot_dimension_numbers<[1], [0], [0], [1], [0, 0, 1, 1], [], []>} : vector<16x64xf32>, vector<64x64xf32>, vector<16x64xf32> -> vector<16x64xf32>
    %c0_8 = arith.constant 0 : index
    %c0_9 = arith.constant 0 : index
    %8 = vector.load %arg7[%c0_8, %c0_9] : memref<1x64xf32, #tpu.memory_space<vmem>>, vector<1x64xf32>
    %9 = vector.broadcast %8 : vector<1x64xf32> to vector<16x64xf32>
    %10 = arith.addf %7, %9 : vector<16x64xf32>
    %c0_10 = arith.constant 0 : index
    %c0_11 = arith.constant 0 : index
    %11 = vector.load %arg5[%c0_10, %c0_11] : memref<64x64xf32, #tpu.memory_space<vmem>>, vector<64x64xf32>
    %cst_12 = arith.constant dense<0.000000e+00> : vector<16x64xf32>
    %12 = tpu.matmul %0, %11, %cst_12 {dimension_numbers = #tpu.dot_dimension_numbers<[1], [0], [0], [1], [0, 0, 1, 1], [], []>} : vector<16x64xf32>, vector<64x64xf32>, vector<16x64xf32> -> vector<16x64xf32>
    %c0_13 = arith.constant 0 : index
    %c0_14 = arith.constant 0 : index
    %13 = vector.load %arg8[%c0_13, %c0_14] : memref<1x64xf32, #tpu.memory_space<vmem>>, vector<1x64xf32>
    %14 = vector.broadcast %13 : vector<1x64xf32> to vector<16x64xf32>
    %15 = arith.addf %12, %14 : vector<16x64xf32>
    %16 = vector.extract_strided_slice %5 {offsets = [0, 0], sizes = [16, 8], strides = [1, 1]} : vector<16x64xf32> to vector<16x8xf32>
    %17 = vector.shape_cast %16 : vector<16x8xf32> to vector<1x16x8xf32>
    %18 = vector.extract_strided_slice %10 {offsets = [0, 0], sizes = [16, 8], strides = [1, 1]} : vector<16x64xf32> to vector<16x8xf32>
    %19 = vector.shape_cast %18 : vector<16x8xf32> to vector<1x16x8xf32>
    %20 = vector.extract_strided_slice %15 {offsets = [0, 0], sizes = [16, 8], strides = [1, 1]} : vector<16x64xf32> to vector<16x8xf32>
    %21 = vector.shape_cast %20 : vector<16x8xf32> to vector<1x16x8xf32>
    %cst_15 = arith.constant dense<0.000000e+00> : vector<1x16x16xf32>
    %22 = tpu.matmul %17, %19, %cst_15 {dimension_numbers = #tpu.dot_dimension_numbers<[2], [2], [1], [1], [0, 0, 0, 1, 1, 1], [0], [0]>} : vector<1x16x8xf32>, vector<1x16x8xf32>, vector<1x16x16xf32> -> vector<1x16x16xf32>
    %cst_16 = arith.constant dense<0xFF800000> : vector<1x16xf32>
    %23 = vector.multi_reduction <maximumf>, %22, %cst_16 [2] : vector<1x16x16xf32> to vector<1x16xf32>
    %24 = vector.shape_cast %23 : vector<1x16xf32> to vector<1x16x1xf32>
    %25 = vector.broadcast %24 : vector<1x16x1xf32> to vector<1x16x16xf32>
    %26 = arith.subf %22, %25 : vector<1x16x16xf32>
    %27 = math.exp %26 : vector<1x16x16xf32>
    %cst_17 = arith.constant dense<0.000000e+00> : vector<1x16xf32>
    %28 = vector.multi_reduction <add>, %27, %cst_17 [2] : vector<1x16x16xf32> to vector<1x16xf32>
    %29 = vector.shape_cast %28 : vector<1x16xf32> to vector<1x16x1xf32>
    %cst_18 = arith.constant 1.000000e+00 : f32
    %30 = vector.broadcast %cst_18 : f32 to vector<1x16x1xf32>
    %31 = arith.divf %30, %29 : vector<1x16x1xf32>
    %cst_19 = arith.constant dense<0.000000e+00> : vector<1x16x8xf32>
    %32 = tpu.matmul %27, %21, %cst_19 {dimension_numbers = #tpu.dot_dimension_numbers<[2], [1], [1], [2], [0, 0, 0, 1, 1, 2], [0], [0]>} : vector<1x16x16xf32>, vector<1x16x8xf32>, vector<1x16x8xf32> -> vector<1x16x8xf32>
    %33 = vector.broadcast %31 : vector<1x16x1xf32> to vector<1x16x8xf32>
    %34 = arith.mulf %32, %33 : vector<1x16x8xf32>
    %35 = vector.shape_cast %34 : vector<1x16x8xf32> to vector<16x8xf32>
    %c0_20 = arith.constant 0 : index
    %c0_21 = arith.constant 0 : index
    %36 = vector.load %arg9[%c0_20, %c0_21] : memref<64x64xf32, #tpu.memory_space<vmem>>, vector<8x64xf32>
    %cst_22 = arith.constant dense<0.000000e+00> : vector<16x64xf32>
    %37 = tpu.matmul %35, %36, %cst_22 {dimension_numbers = #tpu.dot_dimension_numbers<[1], [0], [0], [1], [0, 0, 1, 1], [], []>} : vector<16x8xf32>, vector<8x64xf32>, vector<16x64xf32> -> vector<16x64xf32>
    %38 = vector.extract_strided_slice %5 {offsets = [0, 8], sizes = [16, 8], strides = [1, 1]} : vector<16x64xf32> to vector<16x8xf32>
    %39 = vector.shape_cast %38 : vector<16x8xf32> to vector<1x16x8xf32>
    %40 = vector.extract_strided_slice %10 {offsets = [0, 8], sizes = [16, 8], strides = [1, 1]} : vector<16x64xf32> to vector<16x8xf32>
    %41 = vector.shape_cast %40 : vector<16x8xf32> to vector<1x16x8xf32>
    %42 = vector.extract_strided_slice %15 {offsets = [0, 8], sizes = [16, 8], strides = [1, 1]} : vector<16x64xf32> to vector<16x8xf32>
    %43 = vector.shape_cast %42 : vector<16x8xf32> to vector<1x16x8xf32>
    %cst_23 = arith.constant dense<0.000000e+00> : vector<1x16x16xf32>
    %44 = tpu.matmul %39, %41, %cst_23 {dimension_numbers = #tpu.dot_dimension_numbers<[2], [2], [1], [1], [0, 0, 0, 1, 1, 1], [0], [0]>} : vector<1x16x8xf32>, vector<1x16x8xf32>, vector<1x16x16xf32> -> vector<1x16x16xf32>
    %cst_24 = arith.constant dense<0xFF800000> : vector<1x16xf32>
    %45 = vector.multi_reduction <maximumf>, %44, %cst_24 [2] : vector<1x16x16xf32> to vector<1x16xf32>
    %46 = vector.shape_cast %45 : vector<1x16xf32> to vector<1x16x1xf32>
    %47 = vector.broadcast %46 : vector<1x16x1xf32> to vector<1x16x16xf32>
    %48 = arith.subf %44, %47 : vector<1x16x16xf32>
    %49 = math.exp %48 : vector<1x16x16xf32>
    %cst_25 = arith.constant dense<0.000000e+00> : vector<1x16xf32>
    %50 = vector.multi_reduction <add>, %49, %cst_25 [2] : vector<1x16x16xf32> to vector<1x16xf32>
    %51 = vector.shape_cast %50 : vector<1x16xf32> to vector<1x16x1xf32>
    %cst_26 = arith.constant 1.000000e+00 : f32
    %52 = vector.broadcast %cst_26 : f32 to vector<1x16x1xf32>
    %53 = arith.divf %52, %51 : vector<1x16x1xf32>
    %cst_27 = arith.constant dense<0.000000e+00> : vector<1x16x8xf32>
    %54 = tpu.matmul %49, %43, %cst_27 {dimension_numbers = #tpu.dot_dimension_numbers<[2], [1], [1], [2], [0, 0, 0, 1, 1, 2], [0], [0]>} : vector<1x16x16xf32>, vector<1x16x8xf32>, vector<1x16x8xf32> -> vector<1x16x8xf32>
    %55 = vector.broadcast %53 : vector<1x16x1xf32> to vector<1x16x8xf32>
    %56 = arith.mulf %54, %55 : vector<1x16x8xf32>
    %57 = vector.shape_cast %56 : vector<1x16x8xf32> to vector<16x8xf32>
    %c8 = arith.constant 8 : index
    %c0_28 = arith.constant 0 : index
    %58 = vector.load %arg9[%c8, %c0_28] : memref<64x64xf32, #tpu.memory_space<vmem>>, vector<8x64xf32>
    %cst_29 = arith.constant dense<0.000000e+00> : vector<16x64xf32>
    %59 = tpu.matmul %57, %58, %cst_29 {dimension_numbers = #tpu.dot_dimension_numbers<[1], [0], [0], [1], [0, 0, 1, 1], [], []>} : vector<16x8xf32>, vector<8x64xf32>, vector<16x64xf32> -> vector<16x64xf32>
    %60 = arith.addf %37, %59 : vector<16x64xf32>
    %61 = vector.extract_strided_slice %5 {offsets = [0, 16], sizes = [16, 8], strides = [1, 1]} : vector<16x64xf32> to vector<16x8xf32>
    %62 = vector.shape_cast %61 : vector<16x8xf32> to vector<1x16x8xf32>
    %63 = vector.extract_strided_slice %10 {offsets = [0, 16], sizes = [16, 8], strides = [1, 1]} : vector<16x64xf32> to vector<16x8xf32>
    %64 = vector.shape_cast %63 : vector<16x8xf32> to vector<1x16x8xf32>
    %65 = vector.extract_strided_slice %15 {offsets = [0, 16], sizes = [16, 8], strides = [1, 1]} : vector<16x64xf32> to vector<16x8xf32>
    %66 = vector.shape_cast %65 : vector<16x8xf32> to vector<1x16x8xf32>
    %cst_30 = arith.constant dense<0.000000e+00> : vector<1x16x16xf32>
    %67 = tpu.matmul %62, %64, %cst_30 {dimension_numbers = #tpu.dot_dimension_numbers<[2], [2], [1], [1], [0, 0, 0, 1, 1, 1], [0], [0]>} : vector<1x16x8xf32>, vector<1x16x8xf32>, vector<1x16x16xf32> -> vector<1x16x16xf32>
    %cst_31 = arith.constant dense<0xFF800000> : vector<1x16xf32>
    %68 = vector.multi_reduction <maximumf>, %67, %cst_31 [2] : vector<1x16x16xf32> to vector<1x16xf32>
    %69 = vector.shape_cast %68 : vector<1x16xf32> to vector<1x16x1xf32>
    %70 = vector.broadcast %69 : vector<1x16x1xf32> to vector<1x16x16xf32>
    %71 = arith.subf %67, %70 : vector<1x16x16xf32>
    %72 = math.exp %71 : vector<1x16x16xf32>
    %cst_32 = arith.constant dense<0.000000e+00> : vector<1x16xf32>
    %73 = vector.multi_reduction <add>, %72, %cst_32 [2] : vector<1x16x16xf32> to vector<1x16xf32>
    %74 = vector.shape_cast %73 : vector<1x16xf32> to vector<1x16x1xf32>
    %cst_33 = arith.constant 1.000000e+00 : f32
    %75 = vector.broadcast %cst_33 : f32 to vector<1x16x1xf32>
    %76 = arith.divf %75, %74 : vector<1x16x1xf32>
    %cst_34 = arith.constant dense<0.000000e+00> : vector<1x16x8xf32>
    %77 = tpu.matmul %72, %66, %cst_34 {dimension_numbers = #tpu.dot_dimension_numbers<[2], [1], [1], [2], [0, 0, 0, 1, 1, 2], [0], [0]>} : vector<1x16x16xf32>, vector<1x16x8xf32>, vector<1x16x8xf32> -> vector<1x16x8xf32>
    %78 = vector.broadcast %76 : vector<1x16x1xf32> to vector<1x16x8xf32>
    %79 = arith.mulf %77, %78 : vector<1x16x8xf32>
    %80 = vector.shape_cast %79 : vector<1x16x8xf32> to vector<16x8xf32>
    %c16 = arith.constant 16 : index
    %c0_35 = arith.constant 0 : index
    %81 = vector.load %arg9[%c16, %c0_35] : memref<64x64xf32, #tpu.memory_space<vmem>>, vector<8x64xf32>
    %cst_36 = arith.constant dense<0.000000e+00> : vector<16x64xf32>
    %82 = tpu.matmul %80, %81, %cst_36 {dimension_numbers = #tpu.dot_dimension_numbers<[1], [0], [0], [1], [0, 0, 1, 1], [], []>} : vector<16x8xf32>, vector<8x64xf32>, vector<16x64xf32> -> vector<16x64xf32>
    %83 = arith.addf %60, %82 : vector<16x64xf32>
    %84 = vector.extract_strided_slice %5 {offsets = [0, 24], sizes = [16, 8], strides = [1, 1]} : vector<16x64xf32> to vector<16x8xf32>
    %85 = vector.shape_cast %84 : vector<16x8xf32> to vector<1x16x8xf32>
    %86 = vector.extract_strided_slice %10 {offsets = [0, 24], sizes = [16, 8], strides = [1, 1]} : vector<16x64xf32> to vector<16x8xf32>
    %87 = vector.shape_cast %86 : vector<16x8xf32> to vector<1x16x8xf32>
    %88 = vector.extract_strided_slice %15 {offsets = [0, 24], sizes = [16, 8], strides = [1, 1]} : vector<16x64xf32> to vector<16x8xf32>
    %89 = vector.shape_cast %88 : vector<16x8xf32> to vector<1x16x8xf32>
    %cst_37 = arith.constant dense<0.000000e+00> : vector<1x16x16xf32>
    %90 = tpu.matmul %85, %87, %cst_37 {dimension_numbers = #tpu.dot_dimension_numbers<[2], [2], [1], [1], [0, 0, 0, 1, 1, 1], [0], [0]>} : vector<1x16x8xf32>, vector<1x16x8xf32>, vector<1x16x16xf32> -> vector<1x16x16xf32>
    %cst_38 = arith.constant dense<0xFF800000> : vector<1x16xf32>
    %91 = vector.multi_reduction <maximumf>, %90, %cst_38 [2] : vector<1x16x16xf32> to vector<1x16xf32>
    %92 = vector.shape_cast %91 : vector<1x16xf32> to vector<1x16x1xf32>
    %93 = vector.broadcast %92 : vector<1x16x1xf32> to vector<1x16x16xf32>
    %94 = arith.subf %90, %93 : vector<1x16x16xf32>
    %95 = math.exp %94 : vector<1x16x16xf32>
    %cst_39 = arith.constant dense<0.000000e+00> : vector<1x16xf32>
    %96 = vector.multi_reduction <add>, %95, %cst_39 [2] : vector<1x16x16xf32> to vector<1x16xf32>
    %97 = vector.shape_cast %96 : vector<1x16xf32> to vector<1x16x1xf32>
    %cst_40 = arith.constant 1.000000e+00 : f32
    %98 = vector.broadcast %cst_40 : f32 to vector<1x16x1xf32>
    %99 = arith.divf %98, %97 : vector<1x16x1xf32>
    %cst_41 = arith.constant dense<0.000000e+00> : vector<1x16x8xf32>
    %100 = tpu.matmul %95, %89, %cst_41 {dimension_numbers = #tpu.dot_dimension_numbers<[2], [1], [1], [2], [0, 0, 0, 1, 1, 2], [0], [0]>} : vector<1x16x16xf32>, vector<1x16x8xf32>, vector<1x16x8xf32> -> vector<1x16x8xf32>
    %101 = vector.broadcast %99 : vector<1x16x1xf32> to vector<1x16x8xf32>
    %102 = arith.mulf %100, %101 : vector<1x16x8xf32>
    %103 = vector.shape_cast %102 : vector<1x16x8xf32> to vector<16x8xf32>
    %c24 = arith.constant 24 : index
    %c0_42 = arith.constant 0 : index
    %104 = vector.load %arg9[%c24, %c0_42] : memref<64x64xf32, #tpu.memory_space<vmem>>, vector<8x64xf32>
    %cst_43 = arith.constant dense<0.000000e+00> : vector<16x64xf32>
    %105 = tpu.matmul %103, %104, %cst_43 {dimension_numbers = #tpu.dot_dimension_numbers<[1], [0], [0], [1], [0, 0, 1, 1], [], []>} : vector<16x8xf32>, vector<8x64xf32>, vector<16x64xf32> -> vector<16x64xf32>
    %106 = arith.addf %83, %105 : vector<16x64xf32>
    %107 = vector.extract_strided_slice %5 {offsets = [0, 32], sizes = [16, 8], strides = [1, 1]} : vector<16x64xf32> to vector<16x8xf32>
    %108 = vector.shape_cast %107 : vector<16x8xf32> to vector<1x16x8xf32>
    %109 = vector.extract_strided_slice %10 {offsets = [0, 32], sizes = [16, 8], strides = [1, 1]} : vector<16x64xf32> to vector<16x8xf32>
    %110 = vector.shape_cast %109 : vector<16x8xf32> to vector<1x16x8xf32>
    %111 = vector.extract_strided_slice %15 {offsets = [0, 32], sizes = [16, 8], strides = [1, 1]} : vector<16x64xf32> to vector<16x8xf32>
    %112 = vector.shape_cast %111 : vector<16x8xf32> to vector<1x16x8xf32>
    %cst_44 = arith.constant dense<0.000000e+00> : vector<1x16x16xf32>
    %113 = tpu.matmul %108, %110, %cst_44 {dimension_numbers = #tpu.dot_dimension_numbers<[2], [2], [1], [1], [0, 0, 0, 1, 1, 1], [0], [0]>} : vector<1x16x8xf32>, vector<1x16x8xf32>, vector<1x16x16xf32> -> vector<1x16x16xf32>
    %cst_45 = arith.constant dense<0xFF800000> : vector<1x16xf32>
    %114 = vector.multi_reduction <maximumf>, %113, %cst_45 [2] : vector<1x16x16xf32> to vector<1x16xf32>
    %115 = vector.shape_cast %114 : vector<1x16xf32> to vector<1x16x1xf32>
    %116 = vector.broadcast %115 : vector<1x16x1xf32> to vector<1x16x16xf32>
    %117 = arith.subf %113, %116 : vector<1x16x16xf32>
    %118 = math.exp %117 : vector<1x16x16xf32>
    %cst_46 = arith.constant dense<0.000000e+00> : vector<1x16xf32>
    %119 = vector.multi_reduction <add>, %118, %cst_46 [2] : vector<1x16x16xf32> to vector<1x16xf32>
    %120 = vector.shape_cast %119 : vector<1x16xf32> to vector<1x16x1xf32>
    %cst_47 = arith.constant 1.000000e+00 : f32
    %121 = vector.broadcast %cst_47 : f32 to vector<1x16x1xf32>
    %122 = arith.divf %121, %120 : vector<1x16x1xf32>
    %cst_48 = arith.constant dense<0.000000e+00> : vector<1x16x8xf32>
    %123 = tpu.matmul %118, %112, %cst_48 {dimension_numbers = #tpu.dot_dimension_numbers<[2], [1], [1], [2], [0, 0, 0, 1, 1, 2], [0], [0]>} : vector<1x16x16xf32>, vector<1x16x8xf32>, vector<1x16x8xf32> -> vector<1x16x8xf32>
    %124 = vector.broadcast %122 : vector<1x16x1xf32> to vector<1x16x8xf32>
    %125 = arith.mulf %123, %124 : vector<1x16x8xf32>
    %126 = vector.shape_cast %125 : vector<1x16x8xf32> to vector<16x8xf32>
    %c32 = arith.constant 32 : index
    %c0_49 = arith.constant 0 : index
    %127 = vector.load %arg9[%c32, %c0_49] : memref<64x64xf32, #tpu.memory_space<vmem>>, vector<8x64xf32>
    %cst_50 = arith.constant dense<0.000000e+00> : vector<16x64xf32>
    %128 = tpu.matmul %126, %127, %cst_50 {dimension_numbers = #tpu.dot_dimension_numbers<[1], [0], [0], [1], [0, 0, 1, 1], [], []>} : vector<16x8xf32>, vector<8x64xf32>, vector<16x64xf32> -> vector<16x64xf32>
    %129 = arith.addf %106, %128 : vector<16x64xf32>
    %130 = vector.extract_strided_slice %5 {offsets = [0, 40], sizes = [16, 8], strides = [1, 1]} : vector<16x64xf32> to vector<16x8xf32>
    %131 = vector.shape_cast %130 : vector<16x8xf32> to vector<1x16x8xf32>
    %132 = vector.extract_strided_slice %10 {offsets = [0, 40], sizes = [16, 8], strides = [1, 1]} : vector<16x64xf32> to vector<16x8xf32>
    %133 = vector.shape_cast %132 : vector<16x8xf32> to vector<1x16x8xf32>
    %134 = vector.extract_strided_slice %15 {offsets = [0, 40], sizes = [16, 8], strides = [1, 1]} : vector<16x64xf32> to vector<16x8xf32>
    %135 = vector.shape_cast %134 : vector<16x8xf32> to vector<1x16x8xf32>
    %cst_51 = arith.constant dense<0.000000e+00> : vector<1x16x16xf32>
    %136 = tpu.matmul %131, %133, %cst_51 {dimension_numbers = #tpu.dot_dimension_numbers<[2], [2], [1], [1], [0, 0, 0, 1, 1, 1], [0], [0]>} : vector<1x16x8xf32>, vector<1x16x8xf32>, vector<1x16x16xf32> -> vector<1x16x16xf32>
    %cst_52 = arith.constant dense<0xFF800000> : vector<1x16xf32>
    %137 = vector.multi_reduction <maximumf>, %136, %cst_52 [2] : vector<1x16x16xf32> to vector<1x16xf32>
    %138 = vector.shape_cast %137 : vector<1x16xf32> to vector<1x16x1xf32>
    %139 = vector.broadcast %138 : vector<1x16x1xf32> to vector<1x16x16xf32>
    %140 = arith.subf %136, %139 : vector<1x16x16xf32>
    %141 = math.exp %140 : vector<1x16x16xf32>
    %cst_53 = arith.constant dense<0.000000e+00> : vector<1x16xf32>
    %142 = vector.multi_reduction <add>, %141, %cst_53 [2] : vector<1x16x16xf32> to vector<1x16xf32>
    %143 = vector.shape_cast %142 : vector<1x16xf32> to vector<1x16x1xf32>
    %cst_54 = arith.constant 1.000000e+00 : f32
    %144 = vector.broadcast %cst_54 : f32 to vector<1x16x1xf32>
    %145 = arith.divf %144, %143 : vector<1x16x1xf32>
    %cst_55 = arith.constant dense<0.000000e+00> : vector<1x16x8xf32>
    %146 = tpu.matmul %141, %135, %cst_55 {dimension_numbers = #tpu.dot_dimension_numbers<[2], [1], [1], [2], [0, 0, 0, 1, 1, 2], [0], [0]>} : vector<1x16x16xf32>, vector<1x16x8xf32>, vector<1x16x8xf32> -> vector<1x16x8xf32>
    %147 = vector.broadcast %145 : vector<1x16x1xf32> to vector<1x16x8xf32>
    %148 = arith.mulf %146, %147 : vector<1x16x8xf32>
    %149 = vector.shape_cast %148 : vector<1x16x8xf32> to vector<16x8xf32>
    %c40 = arith.constant 40 : index
    %c0_56 = arith.constant 0 : index
    %150 = vector.load %arg9[%c40, %c0_56] : memref<64x64xf32, #tpu.memory_space<vmem>>, vector<8x64xf32>
    %cst_57 = arith.constant dense<0.000000e+00> : vector<16x64xf32>
    %151 = tpu.matmul %149, %150, %cst_57 {dimension_numbers = #tpu.dot_dimension_numbers<[1], [0], [0], [1], [0, 0, 1, 1], [], []>} : vector<16x8xf32>, vector<8x64xf32>, vector<16x64xf32> -> vector<16x64xf32>
    %152 = arith.addf %129, %151 : vector<16x64xf32>
    %153 = vector.extract_strided_slice %5 {offsets = [0, 48], sizes = [16, 8], strides = [1, 1]} : vector<16x64xf32> to vector<16x8xf32>
    %154 = vector.shape_cast %153 : vector<16x8xf32> to vector<1x16x8xf32>
    %155 = vector.extract_strided_slice %10 {offsets = [0, 48], sizes = [16, 8], strides = [1, 1]} : vector<16x64xf32> to vector<16x8xf32>
    %156 = vector.shape_cast %155 : vector<16x8xf32> to vector<1x16x8xf32>
    %157 = vector.extract_strided_slice %15 {offsets = [0, 48], sizes = [16, 8], strides = [1, 1]} : vector<16x64xf32> to vector<16x8xf32>
    %158 = vector.shape_cast %157 : vector<16x8xf32> to vector<1x16x8xf32>
    %cst_58 = arith.constant dense<0.000000e+00> : vector<1x16x16xf32>
    %159 = tpu.matmul %154, %156, %cst_58 {dimension_numbers = #tpu.dot_dimension_numbers<[2], [2], [1], [1], [0, 0, 0, 1, 1, 1], [0], [0]>} : vector<1x16x8xf32>, vector<1x16x8xf32>, vector<1x16x16xf32> -> vector<1x16x16xf32>
    %cst_59 = arith.constant dense<0xFF800000> : vector<1x16xf32>
    %160 = vector.multi_reduction <maximumf>, %159, %cst_59 [2] : vector<1x16x16xf32> to vector<1x16xf32>
    %161 = vector.shape_cast %160 : vector<1x16xf32> to vector<1x16x1xf32>
    %162 = vector.broadcast %161 : vector<1x16x1xf32> to vector<1x16x16xf32>
    %163 = arith.subf %159, %162 : vector<1x16x16xf32>
    %164 = math.exp %163 : vector<1x16x16xf32>
    %cst_60 = arith.constant dense<0.000000e+00> : vector<1x16xf32>
    %165 = vector.multi_reduction <add>, %164, %cst_60 [2] : vector<1x16x16xf32> to vector<1x16xf32>
    %166 = vector.shape_cast %165 : vector<1x16xf32> to vector<1x16x1xf32>
    %cst_61 = arith.constant 1.000000e+00 : f32
    %167 = vector.broadcast %cst_61 : f32 to vector<1x16x1xf32>
    %168 = arith.divf %167, %166 : vector<1x16x1xf32>
    %cst_62 = arith.constant dense<0.000000e+00> : vector<1x16x8xf32>
    %169 = tpu.matmul %164, %158, %cst_62 {dimension_numbers = #tpu.dot_dimension_numbers<[2], [1], [1], [2], [0, 0, 0, 1, 1, 2], [0], [0]>} : vector<1x16x16xf32>, vector<1x16x8xf32>, vector<1x16x8xf32> -> vector<1x16x8xf32>
    %170 = vector.broadcast %168 : vector<1x16x1xf32> to vector<1x16x8xf32>
    %171 = arith.mulf %169, %170 : vector<1x16x8xf32>
    %172 = vector.shape_cast %171 : vector<1x16x8xf32> to vector<16x8xf32>
    %c48 = arith.constant 48 : index
    %c0_63 = arith.constant 0 : index
    %173 = vector.load %arg9[%c48, %c0_63] : memref<64x64xf32, #tpu.memory_space<vmem>>, vector<8x64xf32>
    %cst_64 = arith.constant dense<0.000000e+00> : vector<16x64xf32>
    %174 = tpu.matmul %172, %173, %cst_64 {dimension_numbers = #tpu.dot_dimension_numbers<[1], [0], [0], [1], [0, 0, 1, 1], [], []>} : vector<16x8xf32>, vector<8x64xf32>, vector<16x64xf32> -> vector<16x64xf32>
    %175 = arith.addf %152, %174 : vector<16x64xf32>
    %176 = vector.extract_strided_slice %5 {offsets = [0, 56], sizes = [16, 8], strides = [1, 1]} : vector<16x64xf32> to vector<16x8xf32>
    %177 = vector.shape_cast %176 : vector<16x8xf32> to vector<1x16x8xf32>
    %178 = vector.extract_strided_slice %10 {offsets = [0, 56], sizes = [16, 8], strides = [1, 1]} : vector<16x64xf32> to vector<16x8xf32>
    %179 = vector.shape_cast %178 : vector<16x8xf32> to vector<1x16x8xf32>
    %180 = vector.extract_strided_slice %15 {offsets = [0, 56], sizes = [16, 8], strides = [1, 1]} : vector<16x64xf32> to vector<16x8xf32>
    %181 = vector.shape_cast %180 : vector<16x8xf32> to vector<1x16x8xf32>
    %cst_65 = arith.constant dense<0.000000e+00> : vector<1x16x16xf32>
    %182 = tpu.matmul %177, %179, %cst_65 {dimension_numbers = #tpu.dot_dimension_numbers<[2], [2], [1], [1], [0, 0, 0, 1, 1, 1], [0], [0]>} : vector<1x16x8xf32>, vector<1x16x8xf32>, vector<1x16x16xf32> -> vector<1x16x16xf32>
    %cst_66 = arith.constant dense<0xFF800000> : vector<1x16xf32>
    %183 = vector.multi_reduction <maximumf>, %182, %cst_66 [2] : vector<1x16x16xf32> to vector<1x16xf32>
    %184 = vector.shape_cast %183 : vector<1x16xf32> to vector<1x16x1xf32>
    %185 = vector.broadcast %184 : vector<1x16x1xf32> to vector<1x16x16xf32>
    %186 = arith.subf %182, %185 : vector<1x16x16xf32>
    %187 = math.exp %186 : vector<1x16x16xf32>
    %cst_67 = arith.constant dense<0.000000e+00> : vector<1x16xf32>
    %188 = vector.multi_reduction <add>, %187, %cst_67 [2] : vector<1x16x16xf32> to vector<1x16xf32>
    %189 = vector.shape_cast %188 : vector<1x16xf32> to vector<1x16x1xf32>
    %cst_68 = arith.constant 1.000000e+00 : f32
    %190 = vector.broadcast %cst_68 : f32 to vector<1x16x1xf32>
    %191 = arith.divf %190, %189 : vector<1x16x1xf32>
    %cst_69 = arith.constant dense<0.000000e+00> : vector<1x16x8xf32>
    %192 = tpu.matmul %187, %181, %cst_69 {dimension_numbers = #tpu.dot_dimension_numbers<[2], [1], [1], [2], [0, 0, 0, 1, 1, 2], [0], [0]>} : vector<1x16x16xf32>, vector<1x16x8xf32>, vector<1x16x8xf32> -> vector<1x16x8xf32>
    %193 = vector.broadcast %191 : vector<1x16x1xf32> to vector<1x16x8xf32>
    %194 = arith.mulf %192, %193 : vector<1x16x8xf32>
    %195 = vector.shape_cast %194 : vector<1x16x8xf32> to vector<16x8xf32>
    %c56 = arith.constant 56 : index
    %c0_70 = arith.constant 0 : index
    %196 = vector.load %arg9[%c56, %c0_70] : memref<64x64xf32, #tpu.memory_space<vmem>>, vector<8x64xf32>
    %cst_71 = arith.constant dense<0.000000e+00> : vector<16x64xf32>
    %197 = tpu.matmul %195, %196, %cst_71 {dimension_numbers = #tpu.dot_dimension_numbers<[1], [0], [0], [1], [0, 0, 1, 1], [], []>} : vector<16x8xf32>, vector<8x64xf32>, vector<16x64xf32> -> vector<16x64xf32>
    %198 = arith.addf %175, %197 : vector<16x64xf32>
    %c0_i32 = arith.constant 0 : i32
    %199 = arith.cmpi eq, %arg1, %c0_i32 : i32
    %200 = arith.extui %199 : i1 to i32
    %c0_i32_72 = arith.constant 0 : i32
    %201 = arith.cmpi ne, %200, %c0_i32_72 : i32
    scf.if %201 {
      %c0_77 = arith.constant 0 : index
      %c0_78 = arith.constant 0 : index
      %208 = vector.load %arg10[%c0_77, %c0_78] : memref<1x64xf32, #tpu.memory_space<vmem>>, vector<1x64xf32>
      %209 = vector.broadcast %208 : vector<1x64xf32> to vector<16x64xf32>
      %210 = arith.addf %198, %209 : vector<16x64xf32>
      %c0_79 = arith.constant 0 : index
      %c0_80 = arith.constant 0 : index
      %211 = vector.load %arg12[%c0_79, %c0_80] : memref<16x64xf32, #tpu.memory_space<vmem>>, vector<16x64xf32>
      tpu.vector_store %arg12[%c0_79, %c0_80], %210 {strides = array<i32>} : memref<16x64xf32, #tpu.memory_space<vmem>>, vector<16x64xf32>,
    } else {
    }
    %c0_i32_73 = arith.constant 0 : i32
    %202 = arith.cmpi sgt, %arg1, %c0_i32_73 : i32
    %203 = arith.extui %202 : i1 to i32
    %c0_i32_74 = arith.constant 0 : i32
    %204 = arith.cmpi ne, %203, %c0_i32_74 : i32
    scf.if %204 {
      %c0_77 = arith.constant 0 : index
      %c0_78 = arith.constant 0 : index
      %208 = vector.load %arg12[%c0_77, %c0_78] : memref<16x64xf32, #tpu.memory_space<vmem>>, vector<16x64xf32>
      %209 = arith.addf %208, %198 : vector<16x64xf32>
      %c0_79 = arith.constant 0 : index
      %c0_80 = arith.constant 0 : index
      %210 = vector.load %arg12[%c0_79, %c0_80] : memref<16x64xf32, #tpu.memory_space<vmem>>, vector<16x64xf32>
      tpu.vector_store %arg12[%c0_79, %c0_80], %209 {strides = array<i32>} : memref<16x64xf32, #tpu.memory_space<vmem>>, vector<16x64xf32>,
    } else {
    }
    %c0_i32_75 = arith.constant 0 : i32
    %205 = arith.cmpi eq, %arg1, %c0_i32_75 : i32
    %206 = arith.extui %205 : i1 to i32
    %c0_i32_76 = arith.constant 0 : i32
    %207 = arith.cmpi ne, %206, %c0_i32_76 : i32
    scf.if %207 {
      %c0_77 = arith.constant 0 : index
      %c0_78 = arith.constant 0 : index
      %208 = vector.load %arg12[%c0_77, %c0_78] : memref<16x64xf32, #tpu.memory_space<vmem>>, vector<16x64xf32>
      %c0_79 = arith.constant 0 : index
      %c0_80 = arith.constant 0 : index
      %209 = vector.load %arg11[%c0_79, %c0_80] : memref<16x64xf32, #tpu.memory_space<vmem>>, vector<16x64xf32>
      tpu.vector_store %arg11[%c0_79, %c0_80], %208 {strides = array<i32>} : memref<16x64xf32, #tpu.memory_space<vmem>>, vector<16x64xf32>,
    } else {
    }
    return
  }
  func.func @transform_0(%arg0: i32, %arg1: i32) -> (i32, i32) {
    %c0_i32 = arith.constant 0 : i32
    %c0_i32_0 = arith.constant 0 : i32
    return %arg0, %c0_i32 : i32, i32
  }
  func.func @transform_1(%arg0: i32, %arg1: i32) -> (i32, i32) {
    %c0_i32 = arith.constant 0 : i32
    %c0_i32_0 = arith.constant 0 : i32
    return %c0_i32, %arg1 : i32, i32
  }
  func.func @transform_2(%arg0: i32, %arg1: i32) -> (i32, i32) {
    %c0_i32 = arith.constant 0 : i32
    %c0_i32_0 = arith.constant 0 : i32
    return %c0_i32, %arg1 : i32, i32
  }
  func.func @transform_3(%arg0: i32, %arg1: i32) -> (i32, i32) {
    %c0_i32 = arith.constant 0 : i32
    %c0_i32_0 = arith.constant 0 : i32
    return %c0_i32, %arg1 : i32, i32
  }
  func.func @transform_4(%arg0: i32, %arg1: i32) -> (i32, i32) {
    %c0_i32 = arith.constant 0 : i32
    %c0_i32_0 = arith.constant 0 : i32
    return %c0_i32, %arg1 : i32, i32
  }
  func.func @transform_5(%arg0: i32, %arg1: i32) -> (i32, i32) {
    %c0_i32 = arith.constant 0 : i32
    %c0_i32_0 = arith.constant 0 : i32
    return %c0_i32, %arg1 : i32, i32
  }
  func.func @transform_6(%arg0: i32, %arg1: i32) -> (i32, i32) {
    %c0_i32 = arith.constant 0 : i32
    %c0_i32_0 = arith.constant 0 : i32
    return %c0_i32, %arg1 : i32, i32
  }
  func.func @transform_7(%arg0: i32, %arg1: i32) -> (i32, i32) {
    %c0_i32 = arith.constant 0 : i32
    %c0_i32_0 = arith.constant 0 : i32
    return %arg1, %c0_i32 : i32, i32
  }
  func.func @transform_8(%arg0: i32, %arg1: i32) -> (i32, i32) {
    %c0_i32 = arith.constant 0 : i32
    %c0_i32_0 = arith.constant 0 : i32
    %c0_i32_1 = arith.constant 0 : i32
    return %c0_i32, %c0_i32_0 : i32, i32
  }
  func.func @transform_9(%arg0: i32, %arg1: i32) -> (i32, i32) {
    %c0_i32 = arith.constant 0 : i32
    %c0_i32_0 = arith.constant 0 : i32
    return %arg0, %c0_i32 : i32, i32
  }
}

</mosaic_0001>

<bundles_post_ra>
// kernel: tpu_custom_call.1
= control target key start
LH: loop header
LB: loop body
LE: loop exit
PB: predicated region body
PF: predicated region fallthrough
CT: control target
= control target key end

     0   :  { %s3136_s0 = inlined_call_operand.hbm [shape: f32[32,64], index: 0, kind: input, shape index: {}]   ;;  %s3137_s1 = inlined_call_operand.hbm [shape: f32[64,64], index: 1, kind: input, shape index: {}]   ;;  %s3138_s2 = inlined_call_operand.hbm [shape: f32[64,64], index: 2, kind: input, shape index: {}]   ;;  %s3139_s3 = inlined_call_operand.hbm [shape: f32[64,64], index: 3, kind: input, shape index: {}]   ;;  %s3140_s4 = inlined_call_operand.vmem [shape: f32[1,64], index: 4, kind: input, shape index: {}]   ;;  %s3141_s5 = inlined_call_operand.vmem [shape: f32[1,64], index: 5, kind: input, shape index: {}]   ;;  %s3142_s6 = inlined_call_operand.vmem [shape: f32[1,64], index: 6, kind: input, shape index: {}]   ;;  %s3143_s7 = inlined_call_operand.hbm [shape: f32[64,64], index: 7, kind: input, shape index: {}]   ;;  %s3144_s8 = inlined_call_operand.vmem [shape: f32[1,64], index: 8, kind: input, shape index: {}]   ;;  %s3145_s9 = inlined_call_operand.hbm [shape: f32[32,64], index: 9, kind: output, shape index: {}]  }
   0x1   :  { %3151 = sst [smem:[#allocation19_spill]] %s3137_s1 }
   0x2   :  { %3152 = sst [smem:[#allocation20_spill]] %s3138_s2 }
   0x3   :  { %3153 = sst [smem:[#allocation21_spill]] %s3139_s3 }
   0x4   :  { %3154 = sst [smem:[#allocation22_spill]] %s3143_s7 }
   0x5   :  { %14 = vsyncpa [#allocation4], 0 }
   0x6   :  { %16 = vsyncpa [#allocation4 + $0x1], 0 }
   0x7   :  { %17 = vsyncpa [#allocation7], 0 }
   0x8   :  { %18 = vsyncpa [#allocation10], 0 }
   0x9   :  { %19 = vsyncpa [#allocation5], 0 }
   0xa   :  { %21 = vsyncpa [#allocation5 + $0x1], 0  ;;  %s2689_s30 = smov 0   ;;  %s2691_s10 = smov 0  }
   0xb   :  { %s2693_s11 = smov 0   ;;  %s2695_s12 = smov 0  }
   0xc   :  { %s2697_s13 = smov 0   ;;  %s2699_s14 = smov 0  }
   0xd LB: > { %s3146_s15 = sadd.s32 4294967295, %s2622_s14   ;;  %s2066_s16 = sadd.s32 4294967294, %s2622_s14   ;;  %s2622_s14 = sphi %s2699_s14, %s27_s14   ;;  %s2618_s13 = sphi %s2697_s13, %s3178_s13   ;;  %s2614_s12 = sphi %s2695_s12, %s3177_s12   ;;  %s2610_s11 = sphi %s2693_s11, %s3176_s11   ;;  %s2606_s10 = sphi %s2691_s10, %s3175_s10   ;;  %s2602_s30 = sphi %s2689_s30, %s3174_s30  }
   0xe   : > { %p59_p0 = scmp.ne.s32.totalorder %s2606_s10, %s2602_s30  ;;  %p2725_p1 = scmp.eq.s32.totalorder %s3146_s15, 0 }
   0xf   : > { %p292_p2 = scmp.eq.s32.totalorder %s2066_s16, 1  ;;  %p2067_p4 = scmp.ge.s32.totalorder %s2622_s14, 1 }
  0x10   : > { %p2731_p3 = por %p2725_p1, %p59_p0  ;;  %p299_p6 = scmp.lt.s32.totalorder %s2622_s14, 3 }
  0x11   : > { %p2736_p5 = por %p292_p2, %p59_p0  ;;  %s3159_s1 = sld [smem:[#allocation19_spill]] }
  0x12   : > { %p2744_p7 = pnand %p2067_p4, %p299_p6  ;;  %s2624_s24 = smov [#allocation6]  }
  0x13   : > { %s3157_s19 = scalar_select %p2736_p5, 1, 0 }
  0x14   : > { %p2185_p8 = pneg %p2744_p7  ;;  %s314_s25 = sshll.u32 %s2624_s24, 4  ;;  %s315_s25 = int_to_ptr.vmem [resolvable:$true] %s314_s25 }
  0x15   : > { %3158 = sst [smem:[#allocation17_spill]] %s3157_s19  ;;  %p2075_p10 = scmp.ge.s32.totalorder %s2622_s14, 2 }
  0x16   : > { %p2752_p9 = pnand %p2185_p8, %p2725_p1  ;;  %s3162_s3 = sld [smem:[#allocation21_spill]] }
  0x17   : > { %s312_s22 = sshll.u32 %s3159_s1, 4  ;;  %s3148_s16 = smov 128   ;;  %s313_s22 = int_to_ptr.hbm [resolvable:$true] %s312_s22 }
  0x18   : > { %s3149_s20 = smov 8   ;;  %s2627_s21 = smov [#allocation9]  }
  0x19   : > { %2188 = dma.hbm_to_vmem [thread:$0]  (!%p2752_p9), %s313_s22, 1024, %s315_s25, [#allocation7], %s3148_s16, %s3148_s16, %s3149_s20  }
  0x1a   : > { %s346_s24 = sshll.u32 %s2627_s21, 4  ;;  %s3163_s2 = sld [smem:[#allocation20_spill]]  ;;  %s347_s24 = int_to_ptr.vmem [resolvable:$true] %s346_s24 }
  0x1b   : > { %s3164_s7 = sld [smem:[#allocation22_spill]]  ;;  %s2628_s28 = smov [#allocation8]  }
  0x1c   : > { %s344_s29 = sshll.u32 %s3162_s3, 4  ;;  %s330_s21 = sshll.u32 %s2628_s28, 4  ;;  %s345_s29 = int_to_ptr.hbm [resolvable:$true] %s344_s29  ;;  %s331_s21 = int_to_ptr.vmem [resolvable:$true] %s330_s21 }
  0x1d   : > { %2194 = dma.hbm_to_vmem [thread:$0]  (!%p2752_p9), %s345_s29, 1024, %s347_s24, [#allocation10], %s3148_s16, %s3148_s16, %s3149_s20  }
  0x1e   : > { %s2629_s1 = smov [#allocation11]   ;;  %s3165_s29 = sadd.s32 4294967295, %s2622_s14  }
  0x1f   : > { %s381_s15 = sshll.u32 %s2629_s1, 4  ;;  %p286_p11 = scmp.eq.s32.totalorder %s3165_s29, 1  ;;  %s382_s15 = int_to_ptr.vmem [resolvable:$true] %s381_s15 }
  0x20   : > { %s328_s19 = sshll.u32 %s3163_s2, 4  ;;  %s39_s24 = sadd.s32 1, %s2618_s13  ;;  %s329_s19 = int_to_ptr.hbm [resolvable:$true] %s328_s19 }
  0x21   : > { %s379_s27 = sshll.u32 %s3164_s7, 4  ;;  %p41_p12 = scmp.ge.s32.totalorder %s39_s24, 2  ;;  %s380_s27 = int_to_ptr.hbm [resolvable:$true] %s379_s27 }
  0x22   : > { %2191 = dma.hbm_to_vmem [thread:$0]  (!%p2752_p9), %s329_s19, 1024, %s331_s21, [#allocation7], %s3148_s16, %s3148_s16, %s3149_s20  }
  0x23   : > { %2197 = dma.hbm_to_vmem [thread:$0]  (!%p2752_p9), %s380_s27, 1024, %s382_s15, [#allocation10], %s3148_s16, %s3148_s16, %s3149_s20  }
  0x24   : > { %s46_s22 = sadd.s32 1, %s2610_s11  ;;  %p53_p13 = scmp.ne.s32.totalorder %s2610_s11, %s2606_s10 }
  0x25   : > { %p54_p0 = scmp.eq.s32.totalorder %s2622_s14, 0  ;;  %s3180_s24 = smov (%p41_p12, %s39_s24), 0 }
  0x26   : > { %3166 = sst [smem:[#allocation18_spill]] %s3180_s24  ;;  %p2795_p2 = por %p286_p11, %p53_p13 }
  0x27   : > { %p2210_p4 = scmp.lt.s32.totalorder %s2622_s14, 2  ;;  %s43_s26 = ssub.s32 %s2618_s13, %s3180_s24 }
  0x28   : > { %s398_s25 = sand.u32 1, %s2610_s11   ;;  %p44_p6 = scmp.eq.s32.totalorder %s43_s26, 0 }
  0x29   : > { %p55_p8 = por %p54_p0, %p53_p13  ;;  %s2076_s27 = sshll.u32 %s398_s25, 4 }
  0x2a   : > { %s2161_s28 = sshll.u32 %s2618_s13, 4  ;;  %s402_s20 = scalar_lea.vmem [#allocation3], %s2076_s27 }
  0x2b   : > { %s2805_s21 = scalar_select %p44_p6, %s2610_s11, %s46_s22  }
  0x2c   : > { %s407_s29 = scalar_lea.hbm %s3136_s0, %s2161_s28  ;;  %s410_s2 = sshll.u32 %s402_s20, 4  ;;  %s411_s2 = int_to_ptr.vmem [resolvable:$true] %s410_s2 }
  0x2d   : > { %s408_s16 = sshll.u32 %s407_s29, 4  ;;  %p2199_p9 = pnand %p2210_p4, %p55_p8  ;;  %s409_s16 = int_to_ptr.hbm [resolvable:$true] %s408_s16 }
  0x2e   : > { %s399_s3 = scalar_lea.sflag [#allocation4], %s398_s25  ;;  %s3168_s7 = smov 8  }
  0x2f   : > { %s3169_s24 = smov 128   ;;  %422 = sbr.rel (%p2744_p7) target bundleno = 2044 (0x7fc), region = 56 }
  0x30   : > { %2201 = dma.hbm_to_vmem [thread:$0]  (!%p2199_p9), %s409_s16, 256, %s411_s2, %s399_s3, %s3169_s24, %s3169_s24, %s3168_s7  }
  0x31   : > { %s2818_s22 = sand.u32 (!%p2744_p7), 1, %s2606_s10  }
  0x32   : > { %s2080_s20 = sshll.u32 (!%p2744_p7), %s2818_s22, 4  ;;  %s425_s26 = scalar_lea.sflag (!%p2744_p7), [#allocation4], %s2818_s22 }
  0x33   : > { %s2824_s27 = scalar_lea.vmem (!%p2744_p7), [#allocation3], %s2080_s20 }
  0x34   : > { %2585 = dma.done.wait (%p2731_p3), %s425_s26, 256  }
  0x35   : > { %2587 = vsyncadd (%p2731_p3), %s425_s26, 4294967040 }
  0x36   : > { %2589 = dma.done.wait (%p2725_p1), [#allocation7], 2048  }
  0x37   : > { %2591 = vsyncadd (%p2725_p1), [#allocation7], 4294965248 }
  0x38   : > { %2593 = dma.done.wait (%p2725_p1), [#allocation10], 2048  }
  0x39   : > { %2595 = vsyncadd (%p2725_p1), [#allocation10], 4294965248  ;;  %v514_v0 = vld [vmem:[#allocation6 + $0x38] sm:$0xff]  ;;  %v513_v2 = vld [vmem:[#allocation6 + $0x30] sm:$0xff]  ;;  %vm519_vm0 = vcmask 523264   ;;  %vm619_vm1 = vcmask 64512  }
  0x3a   : > { %v556_v1 = vld [vmem:[#allocation8 + $0x38] sm:$0xff]  ;;  %534 = vmatpush.msra.mxu0 %v514_v0  ;;  %v555_v3 = vld [vmem:[#allocation8 + $0x30] sm:$0xff]  ;;  %v512_v4 = vld [vmem:[#allocation6 + $0x28] sm:$0xff]  ;;  %s2630_s18 = smov 120   ;;  %s2631_s23 = smov 112   ;;  %vm655_vm2 = vcmask 130048  }
  0x3b   : > { %569 = vmatpush.msra.mxu1 %v556_v1  ;;  %v554_v5 = vld [vmem:[#allocation8 + $0x28] sm:$0xff]  ;;  %v511_v6 = vld [vmem:[#allocation6 + $0x20] sm:$0xff]  ;;  %v510_v8 = vld [vmem:[#allocation6 + $0x18] sm:$0xff]  ;;  %s2632_s16 = smov 104   ;;  %s2633_s28 = smov 96  }
  0x3c   : > { %535 = vmatpush.msra.mxu0 %v513_v2  ;;  %v553_v7 = vld [vmem:[#allocation8 + $0x20] sm:$0xff]  ;;  %v552_v9 = vld [vmem:[#allocation8 + $0x18] sm:$0xff]  ;;  %v509_v10 = vld [vmem:[#allocation6 + $0x10] sm:$0xff]  ;;  %s2634_s1 = smov 88   ;;  %s2635_s15 = smov 80  }
  0x3d   : > { %570 = vmatpush.msra.mxu1 %v555_v3  ;;  %v551_v11 = vld [vmem:[#allocation8 + $0x10] sm:$0xff]  ;;  %v508_v12 = vld [vmem:[#allocation6 + $0x8] sm:$0xff]  ;;  %v507_v14 = vld [vmem:[#allocation6] sm:$0xff]  ;;  %s2636_s29 = smov 72   ;;  %s492_s2 = scalar_lea.vmem [#allocation12], %s2080_s20 }
  0x3e   : > { %536 = vmatpush.msra.mxu0 %v512_v4  ;;  %v550_v13 = vld [vmem:[#allocation8 + $0x8] sm:$0xff]  ;;  %v549_v15 = vld [vmem:[#allocation8] sm:$0xff]  ;;  %v2314_v20 = vld [vmem:[%s3140_s4] ss:$0 sm:$0xff]  ;;  %s2162_s3 = sshll.u32 %s2614_s12, 4  ;;  %s1887_s20 = scalar_lea.sflag [#allocation5], %s2818_s22 }
  0x3f   : > { %571 = vmatpush.msra.mxu1 %v554_v5  ;;  %v505_v16 = vld [vmem:[%s2824_s27] sm:$0xff]  ;;  %v506_v17 = vld [vmem:[%s2824_s27 + $0x8] sm:$0xff] }
  0x40   : > { %537 = vmatpush.msra.mxu0 %v511_v6  ;;  %v2315_v21 = vld [vmem:[%s3141_s5] ss:$0 sm:$0xff]  ;;  %v591_v28 = vld [vmem:[#allocation9 + $0x38] sm:$0xff]  ;;  %v589_v30 = vld [vmem:[#allocation9 + $0x28] sm:$0xff] }
  0x41   : > { %572 = vmatpush.msra.mxu1 %v553_v7  ;;  %v590_v29 = vld [vmem:[#allocation9 + $0x30] sm:$0xff]  ;;  %604 = vmatpush.msra.mxu2 %v591_v28  ;;  %v588_v31 = vld [vmem:[#allocation9 + $0x20] sm:$0xff]  ;;  %v587_v32 = vld [vmem:[#allocation9 + $0x18] sm:$0xff] }
  0x42   : > { %538 = vmatpush.msra.mxu0 %v510_v8  ;;  %v586_v33 = vld [vmem:[#allocation9 + $0x10] sm:$0xff]  ;;  %v585_v34 = vld [vmem:[#allocation9 + $0x8] sm:$0xff]  ;;  %v584_v35 = vld [vmem:[#allocation9] sm:$0xff] }
  0x43   : > { %573 = vmatpush.msra.mxu1 %v552_v9  ;;  %605 = vmatpush.msra.mxu2 %v590_v29  ;;  %v2316_v47 = vld [vmem:[%s3142_s6] ss:$0 sm:$0xff]  ;;  %v735_v52 = vld [vmem:[#allocation11] sm:$0xff] }
  0x44   : > { %539 = vmatpush.msra.mxu0 %v509_v10 }
  0x45   : > { %574 = vmatpush.msra.mxu1 %v551_v11  ;;  %606 = vmatpush.msra.mxu2 %v589_v30 }
  0x46   : > { %540 = vmatpush.msra.mxu0 %v508_v12 }
  0x47   : > { %575 = vmatpush.msra.mxu1 %v550_v13  ;;  %607 = vmatpush.msra.mxu2 %v588_v31 }
  0x48   : > { %541 = vmatpush.msra.mxu0 %v507_v14 }
  0x49   : > { %576 = vmatpush.msra.mxu1 %v549_v15  ;;  %2086 = vmatmul.msk.f32.vlgmr.msra.gmra.mxu0 %vm519_vm0, %v505_v16 }
  0x4a   : > { %2088 = vmatmul.msk.f32.vlgmr.msra.gmra.mxu1 %vm519_vm0, %v505_v16  ;;  %608 = vmatpush.msra.mxu2 %v587_v32 }
  0x4c   : > { %609 = vmatpush.msra.mxu2 %v586_v33 }
  0x4e   : > { %610 = vmatpush.msra.mxu2 %v585_v34 }
  0x50   : > { %611 = vmatpush.msra.mxu2 %v584_v35 }
  0x51   : > { %2087 = vmatmul.msk.f32.gmra.mxu0 %vm519_vm0, %v506_v17  ;;  %2090 = vmatmul.msk.f32.vlgmr.msra.gmra.mxu2 %vm519_vm0, %v505_v16 }
  0x52   : > { %2089 = vmatmul.msk.f32.gmra.mxu1 %vm519_vm0, %v506_v17 }
  0x59   : > { %2091 = vmatmul.msk.f32.gmra.mxu2 %vm519_vm0, %v506_v17 }
  0xc6   : > { %v543_v18 = vpop.f32.mrf.mxu0 }
  0xc7   : > { %v578_v19 = vpop.f32.mrf.mxu1  ;;  %v2862_v27 = vadd.f32 %v2314_v20, %v543_v18 }
  0xc8   : > { %v2860_v26 = vadd.f32 %v2315_v21, %v578_v19 }
  0xce   : > { %v546_v22 = vpop.f32.mrf.mxu0 }
  0xcf   : > { %v581_v23 = vpop.f32.mrf.mxu1  ;;  %v2850_v24 = vadd.f32 %v2314_v20, %v546_v22 }
  0xd0   : > { %v2852_v25 = vadd.f32 %v2315_v21, %v581_v23 }
  0xd1   : > { %738 = vrot.lane.b32.xlu1 %v2850_v24, %s2630_s18 }
  0xd2   : > { %742 = vrot.lane.b32.xlu2 %v2852_v25, %s2630_s18  ;;  %2092 = vmatpush.xpose.msk.msra.mxu3 %vm619_vm1, %v2852_v25 }
  0xd4   : > { %v613_v46 = vpop.f32.mrf.mxu2 }
  0xd5   : > { %v614_v50 = vadd.f32 %v2316_v47, %v613_v46 }
  0xd6   : > { %2093 = vmatpush.xpose.msk.msra.mxu3 %vm619_vm1, %v2860_v26 }
  0xd9   : > { %2094 = vmatmul.msk.f32.vlgmr.msra.gmra.mxu3 %vm619_vm1, %v2862_v27 }
  0xda   : > { %740 = vrot.lane.b32.xlu2 %v2860_v26, %s2630_s18 }
  0xdc   : > { %v616_v48 = vpop.f32.mrf.mxu2 }
  0xdd   : > { %v617_v49 = vadd.f32 %v2316_v47, %v616_v48 }
  0xdf   : > { %724 = vmatpush.msrb.mxu3 %v617_v49  ;;  %v2902_v51 = vpack.i.bf16 %v614_v50, %v617_v49 }
  0xe1   : > { %2095 = vmatmul.msk.f32.gmra.mxu3 %vm619_vm1, %v2850_v24 }
  0xe2   : > { %927 = vrot.lane.b32.xlu2 %v2852_v25, %s2631_s23  ;;  %725 = vmatpush.msrb.mxu3 %v614_v50 }
  0xe4   : > { %913 = vmatpush.msra.mxu3 %v735_v52 }
  0xea   : > { %1083 = vrot.lane.b32.xlu2 %v2852_v25, %s2632_s16 }
  0xf2   : > { %925 = vrot.lane.b32.xlu2 %v2860_v26, %s2631_s23 }
  0xfa   : > { %921 = vrot.lane.b32.xlu2 %v2862_v27, %s2631_s23 }
 0x102   : > { %1079 = vrot.lane.b32.xlu2 %v2850_v24, %s2632_s16 }
 0x10a   : > { %2280 = vrot.lane.b32.xlu2 %v2902_v51, %s2630_s18 }
 0x12c   : > { %v743_v36 = vpop.permute.xlu2 %742 }
 0x12d   : > { %2098 = vmatpush.xpose.msk.msrb.mxu0 %vm619_vm1, %v743_v36  ;;  %2163 = vmatpush.xpose.msk.msrb.mxu2 %vm619_vm1, %v743_v36 }
 0x134   : > { %v741_v37 = vpop.permute.xlu2 %740 }
 0x135   : > { %2099 = vmatpush.xpose.msk.msrb.mxu0 %vm619_vm1, %v741_v37  ;;  %2164 = vmatpush.xpose.msk.msrb.mxu2 %vm619_vm1, %v741_v37 }
 0x13c   : > { %v928_v38 = vpop.permute.xlu2 %927 }
 0x13d   : > { %2108 = vmatpush.xpose.msk.msra.mxu0 %vm619_vm1, %v928_v38 }
 0x143   : > { %v739_v40 = vpop.permute.xlu1 %738 }
 0x144   : > { %v1084_v39 = vpop.permute.xlu2 %1083  ;;  %2101 = vmatmul.msk.f32.vlgmr.msrb.gmra.mxu2 %vm619_vm1, %v739_v40 }
 0x14c   : > { %v926_v41 = vpop.permute.xlu2 %925 }
 0x14d   : > { %2109 = vmatpush.xpose.msk.msra.mxu0 %vm619_vm1, %v926_v41 }
 0x154   : > { %v922_v2 = vpop.permute.xlu2 %921 }
 0x15c   : > { %v649_v42 = vpop.f32.mrf.mxu3  ;;  %v1080_v5 = vpop.permute.xlu2 %1079 }
 0x15d   : > { %v656_v43 = vsel %vm655_vm2, %v649_v42, -inf }
 0x15e   : > { %657 = vmax.xlane.f32.xlu0 %v656_v43 }
 0x164   : > { %v652_v44 = vpop.f32.mrf.mxu3  ;;  %v2281_v6 = vpop.permute.xlu2 %2280 }
 0x165   : > { %v659_v45 = vsel %vm655_vm2, %v652_v44, -inf  ;;  %v2282_v7 = vunpack.i.l.bf16 %v2281_v6  ;;  %v2283_v8 = vunpack.i.h.bf16 %v2281_v6 }
 0x166   : > { %660 = vmax.xlane.f32.xlu0 %v659_v45 }
 0x167   : > { %851 = vmatpush.msrb.mxu1 %v2282_v7 }
 0x169   : > { %852 = vmatpush.msrb.mxu1 %v2283_v8 }
 0x17a   : > { %736 = vrot.lane.b32.xlu0 %v2862_v27, %s2630_s18  ;;  %s1898_s18 = scalar_lea.hbm %s3145_s9, %s2162_s3 }
 0x182   : > { %1081 = vrot.lane.b32.xlu0 %v2860_v26, %s2632_s16 }
 0x18a   : > { %923 = vrot.lane.b32.xlu0 %v2850_v24, %s2631_s23 }
 0x1c7   : > { %v2906_v53 = vpop.f32.mrf.mxu2 }
 0x1c8   : > { %v778_v54 = vsel %vm655_vm2, %v2906_v53, -inf }
 0x1c9   : > { %779 = vmax.xlane.f32.xlu0 %v778_v54 }
 0x1d1   : > { %v658_v55 = vpop.xlane.xlu0 %657 }
 0x1d2   : > { %v662_v56 = vsub.f32 %v649_v42, %v658_v55 }
 0x1d4   : > { %v664_v57 = vmul.f32 1.442695, %v662_v56 }
 0x1d6   : > { %2318 = vpow2.f32 %v664_v57 }
 0x1d9   : > { %v661_v58 = vpop.xlane.xlu0 %660 }
 0x1da   : > { %v663_v59 = vsub.f32 %v652_v44, %v661_v58 }
 0x1dc   : > { %v2319_v60 = vpop.eup %2318  ;;  %v666_v61 = vmul.f32 1.442695, %v663_v59 }
 0x1dd   : > { %2096 = vmatmul.msk.f32.vlgmr.msrb.gmra.mxu3 %vm655_vm2, %v2319_v60  ;;  %v668_v62 = vsel %vm655_vm2, %v2319_v60, 0.0 }
 0x1de   : > { %2320 = vpow2.f32 %v666_v61  ;;  %2116 = vmatpush.xpose.msk.msrb.mxu3 %vm619_vm1, %v1084_v39  ;;  %669 = vadd.xlane.f32.xlu1 %v668_v62 }
 0x1e4   : > { %v2321_v63 = vpop.eup %2320 }
 0x1e5   : > { %2097 = vmatmul.msk.f32.gmra.mxu3 %vm655_vm2, %v2321_v63  ;;  %v671_v0 = vsel %vm655_vm2, %v2321_v63, 0.0 }
 0x1e6   : > { %672 = vadd.xlane.f32.xlu1 %v671_v0 }
 0x1ec   : > { %v737_v1 = vpop.permute.xlu0 %736 }
 0x1ed   : > { %2100 = vmatmul.msk.f32.vlgmr.msrb.gmra.mxu0 %vm619_vm1, %v737_v1 }
 0x1f4   : > { %v1082_v3 = vpop.permute.xlu0 %1081 }
 0x1f5   : > { %2110 = vmatmul.msk.f32.vlgmr.msra.gmra.mxu0 %vm619_vm1, %v922_v2  ;;  %2117 = vmatpush.xpose.msk.msrb.mxu3 %vm619_vm1, %v1082_v3 }
 0x1fc   : > { %v924_v4 = vpop.permute.xlu0 %923 }
 0x1fd   : > { %2111 = vmatmul.msk.f32.gmra.mxu0 %vm619_vm1, %v924_v4 }
 0x1ff   : > { %1077 = vrot.lane.b32.xlu1 %v2862_v27, %s2632_s16 }
 0x23c   : > { %v780_v47 = vpop.xlane.xlu0 %779 }
 0x23d   : > { %v782_v50 = vsub.f32 %v2906_v53, %v780_v47 }
 0x23f   : > { %v785_v52 = vmul.f32 1.442695, %v782_v50 }
 0x251   : > { %v670_v9 = vpop.xlane.xlu1 %669 }
 0x252   : > { %2322 = vrcp.f32 %v670_v9  ;;  %v685_v14 = vand.u32 2147483648, %v670_v9  ;;  %v683_v16 = vand.u32 2147483647, %v670_v9  ;;  %vm679_vm4 = vweird.f32 %v670_v9 }
 0x254   : > { %v686_v19 = vor.u32 1.1754944e-38, %v685_v14  ;;  %vm684_vm6 = vcmp.eq.f32.partialorder %v683_v16, 8.507059e+37 }
 0x258   : > { %v2323_v10 = vpop.eup %2322 }
 0x259   : > { %v675_v11 = vmul.f32 %v2323_v10, %v670_v9  ;;  %v673_v12 = vpop.xlane.xlu1 %672  ;;  %vm680_vm3 = vweird.f32 %v2323_v10 }
 0x25a   : > { %2324 = vrcp.f32 %v673_v12  ;;  %vm681_vm5 = vmor %vm679_vm4, %vm680_vm3  ;;  %v700_v30 = vand.u32 2147483648, %v673_v12  ;;  %v698_v32 = vand.u32 2147483647, %v673_v12  ;;  %vm694_vm8 = vweird.f32 %v673_v12 }
 0x25b   : > { %v676_v13 = vsub.f32 1.0, %v675_v11 }
 0x25c   : > { %v701_v34 = vor.u32 1.1754944e-38, %v700_v30  ;;  %vm699_vm10 = vcmp.eq.f32.partialorder %v698_v32, 8.507059e+37  ;;  %v1045_v30 = vld [vmem:[#allocation11 + $0x10] sm:$0xff] }
 0x25d   : > { %v677_v15 = vmul.f32 %v2323_v10, %v676_v13 }
 0x25f   : > { %v678_v17 = vadd.f32 %v2323_v10, %v677_v15 }
 0x260   : > { %v2325_v18 = vpop.eup %2324  ;;  %v727_v20 = vpop.f32.mrf.mxu3 }
 0x261   : > { %v690_v21 = vmul.f32 %v2325_v18, %v673_v12  ;;  %v682_v22 = vsel %vm681_vm5, %v2323_v10, %v678_v17  ;;  %vm695_vm7 = vweird.f32 %v2325_v18 }
 0x262   : > { %v687_v23 = vsel %vm684_vm6, %v686_v19, %v682_v22  ;;  %vm696_vm9 = vmor %vm694_vm8, %vm695_vm7 }
 0x263   : > { %v691_v28 = vsub.f32 1.0, %v690_v21  ;;  %v733_v29 = vmul.f32 %v727_v20, %v687_v23 }
 0x265   : > { %2106 = vmatmul.msk.f32.vlgmr.msra.gmra.mxu3 %vm619_vm1, %v733_v29  ;;  %v692_v31 = vmul.f32 %v2325_v18, %v691_v28 }
 0x267   : > { %v693_v33 = vadd.f32 %v2325_v18, %v692_v31 }
 0x268   : > { %v730_v37 = vpop.f32.mrf.mxu3 }
 0x269   : > { %v697_v35 = vsel %vm696_vm9, %v2325_v18, %v693_v33  ;;  %v862_v18 = vld [vmem:[#allocation11 + $0x8] sm:$0xff] }
 0x26a   : > { %v702_v36 = vsel %vm699_vm10, %v701_v34, %v697_v35  ;;  %v769_v38 = vpop.f32.mrf.mxu0  ;;  %884 = vmatpush.msra.mxu2 %v862_v18 }
 0x26b   : > { %v734_v39 = vmul.f32 %v730_v37, %v702_v36  ;;  %v775_v40 = vsel %vm655_vm2, %v769_v38, -inf }
 0x26c   : > { %776 = vmax.xlane.f32.xlu1 %v775_v40  ;;  %1067 = vmatpush.msrb.mxu2 %v1045_v30 }
 0x26d   : > { %2107 = vmatmul.msk.f32.gmra.mxu3 %vm619_vm1, %v734_v39 }
 0x271   : > { %v1078_v43 = vpop.permute.xlu1 %1077 }
 0x272   : > { %v954_v41 = vpop.f32.mrf.mxu0 }
 0x273   : > { %v960_v42 = vsel %vm655_vm2, %v954_v41, -inf }
 0x274   : > { %961 = vmax.xlane.f32.xlu2 %v960_v42  ;;  %v1201_v42 = vld [vmem:[#allocation11 + $0x18] sm:$0xff] }
 0x275   : > { %2118 = vmatmul.msk.f32.vlgmr.msrb.gmra.mxu3 %vm619_vm1, %v1078_v43 }
 0x27a   : > { %v957_v44 = vpop.f32.mrf.mxu0 }
 0x27b   : > { %v963_v45 = vsel %vm655_vm2, %v957_v44, -inf }
 0x27c   : > { %964 = vmax.xlane.f32.xlu1 %v963_v45 }
 0x27d   : > { %2119 = vmatmul.msk.f32.gmra.mxu3 %vm619_vm1, %v1080_v5 }
 0x28c   : > { %2290 = vrot.lane.b32.xlu2 %v2902_v51, %s2632_s16  ;;  %s1901_s16 = sshll.u32 %s1898_s18, 4  ;;  %s1902_s16 = int_to_ptr.hbm [resolvable:$true] %s1901_s16 }
 0x28d   : > { %s2546_s24 = sshra.s32 %s1902_s16, 4  ;;  %s2547_s24 = int_to_ptr.hbm [resolvable:$true] %s2546_s24 }
 0x28e   : > { %s2548_s25 = scalar_lea.hbm %s2547_s24, 16  ;;  %p2553_p11 = scmp.lt.s32.totalorder %s2547_s24, %s3145_s9 }
 0x28f   : > { %p2549_p1 = scmp.ne.s32.totalorder %s2547_s24, %s2548_s25 }
 0x291   : > { %p2550_p3 = pnand %p2549_p1, %p2795_p2 }
 0x293   : > { %p2551_p7 = pneg %p2550_p3 }
 0x295   : > { %2285 = vrot.lane.b32.xlu1 %v2902_v51, %s2631_s23  ;;  %s1899_s23 = sshll.u32 %s492_s2, 4  ;;  %s1900_s23 = int_to_ptr.vmem [resolvable:$true] %s1899_s23 }
 0x2df   : > { %v777_v46 = vpop.xlane.xlu1 %776 }
 0x2e0   : > { %v781_v48 = vsub.f32 %v769_v38, %v777_v46 }
 0x2e2   : > { %v783_v49 = vmul.f32 1.442695, %v781_v48 }
 0x2e4   : > { %2326 = vpow2.f32 %v783_v49 }
 0x2e5   : > { %2328 = vpow2.f32 %v785_v52 }
 0x2e7   : > { %v962_v54 = vpop.xlane.xlu2 %961 }
 0x2e8   : > { %v966_v55 = vsub.f32 %v954_v41, %v962_v54  ;;  %v2933_v56 = vpop.f32.mrf.mxu3 }
 0x2ea   : > { %v2327_v57 = vpop.eup %2326  ;;  %v968_v58 = vmul.f32 1.442695, %v966_v55 }
 0x2eb   : > { %2102 = vmatmul.msk.f32.vlgmr.msrb.gmra.mxu1 %vm655_vm2, %v2327_v57  ;;  %v2329_v62 = vpop.eup %2328  ;;  %v787_v9 = vsel %vm655_vm2, %v2327_v57, 0.0 }
 0x2ec   : > { %2330 = vpow2.f32 %v968_v58  ;;  %v790_v12 = vsel %vm655_vm2, %v2329_v62, 0.0 }
 0x2ef   : > { %v2291_v59 = vpop.permute.xlu2 %2290  ;;  %v965_v3 = vpop.xlane.xlu1 %964 }
 0x2f0   : > { %v2292_v60 = vunpack.i.l.bf16 %v2291_v59  ;;  %v2936_v61 = vpop.f32.mrf.mxu3  ;;  %v2293_v0 = vunpack.i.h.bf16 %v2291_v59  ;;  %v967_v6 = vsub.f32 %v957_v44, %v965_v3 }
 0x2f2   : > { %v2331_v63 = vpop.eup %2330  ;;  %1190 = vmatpush.msrb.mxu0 %v2292_v60  ;;  %v970_v10 = vmul.f32 1.442695, %v967_v6 }
 0x2f3   : > { %2103 = vmatmul.msk.f32.gmra.mxu1 %vm655_vm2, %v2329_v62  ;;  %v972_v53 = vsel %vm655_vm2, %v2331_v63, 0.0 }
 0x2f4   : > { %1191 = vmatpush.msrb.mxu0 %v2293_v0  ;;  %973 = vadd.xlane.f32.xlu1 %v972_v53  ;;  %2332 = vpow2.f32 %v970_v10 }
 0x2f8   : > { %v1110_v1 = vpop.f32.mrf.mxu3 }
 0x2f9   : > { %v1116_v2 = vsel %vm655_vm2, %v1110_v1, -inf }
 0x2fa   : > { %1117 = vmax.xlane.f32.xlu0 %v1116_v2  ;;  %v2333_v13 = vpop.eup %2332 }
 0x2fb   : > { %v975_v14 = vsel %vm655_vm2, %v2333_v13, 0.0 }
 0x300   : > { %v1113_v4 = vpop.f32.mrf.mxu3 }
 0x301   : > { %v1119_v5 = vsel %vm655_vm2, %v1113_v4, -inf }
 0x302   : > { %1120 = vmax.xlane.f32.xlu0 %v1119_v5 }
 0x307   : > { %v2286_v7 = vpop.permute.xlu1 %2285 }
 0x308   : > { %v2287_v8 = vunpack.i.l.bf16 %v2286_v7  ;;  %v2288_v11 = vunpack.i.h.bf16 %v2286_v7 }
 0x30a   : > { %788 = vadd.xlane.f32.xlu0 %v787_v9  ;;  %1034 = vmatpush.msra.mxu1 %v2287_v8 }
 0x30c   : > { %1035 = vmatpush.msra.mxu1 %v2288_v11 }
 0x30d   : > { %1233 = vrot.lane.b32.xlu1 %v2862_v27, %s2633_s28  ;;  %2112 = vmatmul.msk.f32.vlgmr.msra.gmra.mxu1 %vm655_vm2, %v2331_v63 }
 0x30e   : > { %1223 = vmatpush.msrb.mxu1 %v1201_v42 }
 0x312   : > { %791 = vadd.xlane.f32.xlu0 %v790_v12 }
 0x315   : > { %1391 = vrot.lane.b32.xlu1 %v2850_v24, %s2634_s1  ;;  %2113 = vmatmul.msk.f32.gmra.mxu1 %vm655_vm2, %v2333_v13 }
 0x31a   : > { %976 = vadd.xlane.f32.xlu0 %v975_v14 }
 0x32e   : > { %1239 = vrot.lane.b32.xlu0 %v2852_v25, %s2633_s28 }
 0x336   : > { %1237 = vrot.lane.b32.xlu0 %v2860_v26, %s2633_s28 }
 0x33e   : > { %1395 = vrot.lane.b32.xlu0 %v2852_v25, %s2634_s1 }
 0x346   : > { %1235 = vrot.lane.b32.xlu0 %v2850_v24, %s2633_s28 }
 0x367   : > { %v2961_v29 = vpop.xlane.xlu1 %973 }
 0x368   : > { %v854_v41 = vpop.f32.mrf.mxu1  ;;  %v989_v7 = vand.u32 2147483648, %v2961_v29  ;;  %vm983_vm7 = vweird.f32 %v2961_v29  ;;  %v987_v8 = vand.u32 2147483647, %v2961_v29 }
 0x36a   : > { %v990_v11 = vor.u32 1.1754944e-38, %v989_v7  ;;  %vm988_vm9 = vcmp.eq.f32.partialorder %v987_v8, 8.507059e+37 }
 0x36d   : > { %v1118_v15 = vpop.xlane.xlu0 %1117 }
 0x36e   : > { %v1122_v16 = vsub.f32 %v1110_v1, %v1118_v15 }
 0x370   : > { %v1124_v17 = vmul.f32 1.442695, %v1122_v16  ;;  %v857_v0 = vpop.f32.mrf.mxu1 }
 0x372   : > { %2334 = vpow2.f32 %v1124_v17 }
 0x375   : > { %v1121_v19 = vpop.xlane.xlu0 %1120 }
 0x376   : > { %v1123_v20 = vsub.f32 %v1113_v4, %v1121_v19 }
 0x378   : > { %v2335_v21 = vpop.eup %2334  ;;  %v1126_v22 = vmul.f32 1.442695, %v1123_v20 }
 0x379   : > { %2120 = vmatmul.msk.f32.vlgmr.msrb.gmra.mxu0 %vm655_vm2, %v2335_v21  ;;  %v1128_v23 = vsel %vm655_vm2, %v2335_v21, 0.0 }
 0x37a   : > { %2336 = vpow2.f32 %v1126_v22  ;;  %1129 = vadd.xlane.f32.xlu2 %v1128_v23 }
 0x37d   : > { %v789_v28 = vpop.xlane.xlu0 %788 }
 0x37e   : > { %2338 = vrcp.f32 %v789_v28  ;;  %v804_v38 = vand.u32 2147483648, %v789_v28  ;;  %v802_v40 = vand.u32 2147483647, %v789_v28  ;;  %vm798_vm12 = vweird.f32 %v789_v28 }
 0x37f   : > { %2340 = vrcp.f32 %v2961_v29 }
 0x380   : > { %v2337_v31 = vpop.eup %2336  ;;  %v805_v46 = vor.u32 1.1754944e-38, %v804_v38  ;;  %vm803_vm14 = vcmp.eq.f32.partialorder %v802_v40, 8.507059e+37 }
 0x381   : > { %2121 = vmatmul.msk.f32.gmra.mxu0 %vm655_vm2, %v2337_v31  ;;  %v1131_v32 = vsel %vm655_vm2, %v2337_v31, 0.0 }
 0x382   : > { %1132 = vadd.xlane.f32.xlu0 %v1131_v32 }
 0x384   : > { %v2339_v33 = vpop.eup %2338 }
 0x385   : > { %v794_v34 = vmul.f32 %v2339_v33, %v789_v28  ;;  %v792_v35 = vpop.xlane.xlu0 %791  ;;  %v2341_v37 = vpop.eup %2340  ;;  %vm799_vm11 = vweird.f32 %v2339_v33 }
 0x386   : > { %2342 = vrcp.f32 %v792_v35  ;;  %v979_v43 = vmul.f32 %v2341_v37, %v2961_v29  ;;  %vm800_vm13 = vmor %vm798_vm12, %vm799_vm11  ;;  %v819_v57 = vand.u32 2147483648, %v792_v35  ;;  %v817_v59 = vand.u32 2147483647, %v792_v35  ;;  %v1234_v29 = vpop.permute.xlu1 %1233 }
 0x387   : > { %v795_v36 = vsub.f32 1.0, %v794_v34  ;;  %vm813_vm3 = vweird.f32 %v792_v35  ;;  %vm984_vm6 = vweird.f32 %v2341_v37 }
 0x388   : > { %v980_v52 = vsub.f32 1.0, %v979_v43  ;;  %v820_v53 = vor.u32 1.1754944e-38, %v819_v57  ;;  %vm818_vm5 = vcmp.eq.f32.partialorder %v817_v59, 8.507059e+37  ;;  %vm985_vm8 = vmor %vm983_vm7, %vm984_vm6 }
 0x389   : > { %v796_v39 = vmul.f32 %v2339_v33, %v795_v36 }
 0x38a   : > { %v981_v60 = vmul.f32 %v2341_v37, %v980_v52  ;;  %v1037_v12 = vpop.f32.mrf.mxu1 }
 0x38b   : > { %v797_v44 = vadd.f32 %v2339_v33, %v796_v39 }
 0x38c   : > { %v2343_v45 = vpop.eup %2342  ;;  %v982_v4 = vadd.f32 %v2341_v37, %v981_v60 }
 0x38d   : > { %v801_v47 = vsel %vm800_vm13, %v2339_v33, %v797_v44  ;;  %v809_v48 = vmul.f32 %v2343_v45, %v792_v35  ;;  %v977_v49 = vpop.xlane.xlu0 %976  ;;  %vm814_vm15 = vweird.f32 %v2343_v45 }
 0x38e   : > { %v806_v50 = vsel %vm803_vm14, %v805_v46, %v801_v47  ;;  %2344 = vrcp.f32 %v977_v49  ;;  %vm815_vm4 = vmor %vm813_vm3, %vm814_vm15  ;;  %v986_v10 = vsel %vm985_vm8, %v2341_v37, %v982_v4  ;;  %v1004_v15 = vand.u32 2147483648, %v977_v49 }
 0x38f   : > { %v810_v54 = vsub.f32 1.0, %v809_v48  ;;  %v860_v55 = vmul.f32 %v854_v41, %v806_v50  ;;  %v991_v14 = vsel %vm988_vm9, %v990_v11, %v986_v10  ;;  %vm998_vm11 = vweird.f32 %v977_v49 }
 0x390   : > { %v1043_v16 = vmul.f32 %v1037_v12, %v991_v14  ;;  %v1002_v17 = vand.u32 2147483647, %v977_v49  ;;  %v1005_v20 = vor.u32 1.1754944e-38, %v1004_v15 }
 0x391   : > { %v811_v58 = vmul.f32 %v2343_v45, %v810_v54  ;;  %2104 = vmatmul.msk.f32.vlgmr.msra.gmra.mxu2 %vm619_vm1, %v860_v55 }
 0x392   : > { %1393 = vrot.lane.b32.xlu2 %v2860_v26, %s2634_s1  ;;  %vm1003_vm13 = vcmp.eq.f32.partialorder %v1002_v17, 8.507059e+37  ;;  %v1040_v22 = vpop.f32.mrf.mxu1 }
 0x393   : > { %v812_v62 = vadd.f32 %v2343_v45, %v811_v58 }
 0x394   : > { %v2345_v63 = vpop.eup %2344 }
 0x395   : > { %v994_v1 = vmul.f32 %v2345_v63, %v977_v49  ;;  %v816_v2 = vsel %vm815_vm4, %v2343_v45, %v812_v62  ;;  %vm999_vm10 = vweird.f32 %v2345_v63 }
 0x396   : > { %1389 = vrot.lane.b32.xlu0 %v2862_v27, %s2634_s1  ;;  %v821_v3 = vsel %vm818_vm5, %v820_v53, %v816_v2  ;;  %vm1000_vm12 = vmor %vm998_vm11, %vm999_vm10  ;;  %v1392_v53 = vpop.permute.xlu1 %1391 }
 0x397   : > { %v995_v5 = vsub.f32 1.0, %v994_v1  ;;  %v861_v6 = vmul.f32 %v857_v0, %v821_v3 }
 0x399   : > { %v996_v9 = vmul.f32 %v2345_v63, %v995_v5  ;;  %2105 = vmatmul.msk.f32.gmra.mxu2 %vm619_vm1, %v861_v6 }
 0x39b   : > { %v997_v13 = vadd.f32 %v2345_v63, %v996_v9 }
 0x39d   : > { %v1001_v19 = vsel %vm1000_vm12, %v2345_v63, %v997_v13 }
 0x39e   : > { %v1006_v21 = vsel %vm1003_vm13, %v1005_v20, %v1001_v19  ;;  %v1357_v20 = vld [vmem:[#allocation11 + $0x20] sm:$0xff] }
 0x39f   : > { %v1044_v23 = vmul.f32 %v1040_v22, %v1006_v21  ;;  %1379 = vmatpush.msra.mxu0 %v1357_v20 }
 0x3a0   : > { %v1240_v18 = vpop.permute.xlu0 %1239 }
 0x3a1   : > { %2114 = vmatmul.msk.f32.vlgmr.msrb.gmra.mxu2 %vm619_vm1, %v1043_v16 }
 0x3a2   : > { %2124 = vmatpush.xpose.msk.msra.mxu2 %vm619_vm1, %v1240_v18 }
 0x3a8   : > { %v1238_v28 = vpop.permute.xlu0 %1237 }
 0x3a9   : > { %2115 = vmatmul.msk.f32.gmra.mxu2 %vm619_vm1, %v1044_v23 }
 0x3aa   : > { %2125 = vmatpush.xpose.msk.msra.mxu2 %vm619_vm1, %v1238_v28 }
 0x3b0   : > { %v1396_v30 = vpop.permute.xlu0 %1395 }
 0x3b1   : > { %2126 = vmatmul.msk.f32.vlgmr.msra.gmra.mxu2 %vm619_vm1, %v1234_v29  ;;  %2132 = vmatpush.xpose.msk.msra.mxu1 %vm619_vm1, %v1396_v30 }
 0x3b8   : > { %v1236_v31 = vpop.permute.xlu0 %1235 }
 0x3b9   : > { %2127 = vmatmul.msk.f32.gmra.mxu2 %vm619_vm1, %v1236_v31 }
 0x3ed   : > { %v1130_v32 = vpop.xlane.xlu2 %1129 }
 0x3ee   : > { %2346 = vrcp.f32 %v1130_v32  ;;  %v1145_v38 = vand.u32 2147483648, %v1130_v32  ;;  %v1143_v40 = vand.u32 2147483647, %v1130_v32  ;;  %vm1139_vm15 = vweird.f32 %v1130_v32 }
 0x3f0   : > { %v1146_v43 = vor.u32 1.1754944e-38, %v1145_v38  ;;  %vm1144_vm4 = vcmp.eq.f32.partialorder %v1143_v40, 8.507059e+37 }
 0x3f4   : > { %v2347_v33 = vpop.eup %2346 }
 0x3f5   : > { %v1135_v34 = vmul.f32 %v2347_v33, %v1130_v32  ;;  %v1394_v35 = vpop.permute.xlu2 %1393  ;;  %v1133_v36 = vpop.xlane.xlu0 %1132  ;;  %vm1140_vm14 = vweird.f32 %v2347_v33 }
 0x3f6   : > { %2348 = vrcp.f32 %v1133_v36  ;;  %2133 = vmatpush.xpose.msk.msra.mxu1 %vm619_vm1, %v1394_v35  ;;  %vm1141_vm3 = vmor %vm1139_vm15, %vm1140_vm14  ;;  %v1193_v44 = vpop.f32.mrf.mxu0  ;;  %v1160_v50 = vand.u32 2147483648, %v1133_v36  ;;  %v1158_v54 = vand.u32 2147483647, %v1133_v36  ;;  %vm1154_vm6 = vweird.f32 %v1133_v36 }
 0x3f7   : > { %v1136_v37 = vsub.f32 1.0, %v1135_v34 }
 0x3f8   : > { %v1161_v57 = vor.u32 1.1754944e-38, %v1160_v50  ;;  %vm1159_vm8 = vcmp.eq.f32.partialorder %v1158_v54, 8.507059e+37 }
 0x3f9   : > { %v1137_v39 = vmul.f32 %v2347_v33, %v1136_v37 }
 0x3fb   : > { %v1138_v41 = vadd.f32 %v2347_v33, %v1137_v39 }
 0x3fc   : > { %v2349_v42 = vpop.eup %2348 }
 0x3fd   : > { %v1150_v45 = vmul.f32 %v2349_v42, %v1133_v36  ;;  %v1142_v46 = vsel %vm1141_vm3, %v2347_v33, %v1138_v41  ;;  %vm1155_vm5 = vweird.f32 %v2349_v42 }
 0x3fe   : > { %v1147_v47 = vsel %vm1144_vm4, %v1146_v43, %v1142_v46  ;;  %vm1156_vm7 = vmor %vm1154_vm6, %vm1155_vm5  ;;  %v1196_v60 = vpop.f32.mrf.mxu0 }
 0x3ff   : > { %v1151_v48 = vsub.f32 1.0, %v1150_v45  ;;  %v1199_v49 = vmul.f32 %v1193_v44, %v1147_v47 }
 0x401   : > { %v1152_v52 = vmul.f32 %v2349_v42, %v1151_v48  ;;  %2122 = vmatmul.msk.f32.vlgmr.msrb.gmra.mxu1 %vm619_vm1, %v1199_v49 }
 0x403   : > { %v1153_v55 = vadd.f32 %v2349_v42, %v1152_v52 }
 0x405   : > { %v1157_v58 = vsel %vm1156_vm7, %v2349_v42, %v1153_v55 }
 0x406   : > { %v1162_v59 = vsel %vm1159_vm8, %v1161_v57, %v1157_v58 }
 0x407   : > { %v1200_v62 = vmul.f32 %v1196_v60, %v1162_v59 }
 0x408   : > { %v1390_v63 = vpop.permute.xlu0 %1389 }
 0x409   : > { %2123 = vmatmul.msk.f32.gmra.mxu1 %vm619_vm1, %v1200_v62 }
 0x411   : > { %2134 = vmatmul.msk.f32.vlgmr.msra.gmra.mxu1 %vm619_vm1, %v1390_v63 }
 0x414   : > { %v886_v0 = vpop.f32.mrf.mxu2 }
 0x415   : > { %v916_v2 = vadd.f32 %v2933_v56, %v886_v0 }
 0x419   : > { %2135 = vmatmul.msk.f32.gmra.mxu1 %vm619_vm1, %v1392_v53 }
 0x41c   : > { %v889_v1 = vpop.f32.mrf.mxu2 }
 0x41d   : > { %v919_v5 = vadd.f32 %v2936_v61, %v889_v1 }
 0x424   : > { %v1069_v3 = vpop.f32.mrf.mxu2 }
 0x425   : > { %v1075_v4 = vadd.f32 %v1069_v3, %v916_v2 }
 0x42c   : > { %v1072_v6 = vpop.f32.mrf.mxu2 }
 0x42d   : > { %v1076_v7 = vadd.f32 %v1072_v6, %v919_v5 }
 0x434   : > { %v1266_v8 = vpop.f32.mrf.mxu2 }
 0x435   : > { %v1272_v9 = vsel %vm655_vm2, %v1266_v8, -inf }
 0x436   : > { %1273 = vmax.xlane.f32.xlu0 %v1272_v9 }
 0x43c   : > { %v1269_v10 = vpop.f32.mrf.mxu2 }
 0x43d   : > { %v1275_v11 = vsel %vm655_vm2, %v1269_v10, -inf }
 0x43e   : > { %1276 = vmax.xlane.f32.xlu1 %v1275_v11 }
 0x457   : > { %2300 = vrot.lane.b32.xlu1 %v2902_v51, %s2634_s1  ;;  %s2552_s1 = scalar_lea.hbm %s3145_s9, 32 }
 0x458   : > { %p2554_p12 = scmp.lt.s32.totalorder %s2552_s1, %s2548_s25 }
 0x45a   : > { %p2555_p13 = por %p2554_p12, %p2553_p11 }
 0x45c   : > { %p2556_p0 = pnand %p2555_p13, %p2551_p7 }
 0x45f   : > { %1551 = vrot.lane.b32.xlu1 %v2852_v25, %s2635_s15 }
 0x467   : > { %1549 = vrot.lane.b32.xlu1 %v2860_v26, %s2635_s15 }
 0x46f   : > { %1705 = vrot.lane.b32.xlu1 %v2860_v26, %s2636_s29 }
 0x477   : > { %1701 = vrot.lane.b32.xlu1 %v2862_v27, %s2636_s29 }
 0x47e   : > { %v1225_v56 = vpop.f32.mrf.mxu1 }
 0x47f   : > { %v3002_v61 = vadd.f32 %v1225_v56, %v1075_v4  ;;  %1703 = vrot.lane.b32.xlu1 %v2850_v24, %s2636_s29 }
 0x486   : > { %v1228_v12 = vpop.f32.mrf.mxu1 }
 0x487   : > { %v3006_v13 = vadd.f32 %v1228_v12, %v1076_v7 }
 0x48e   : > { %v1422_v14 = vpop.f32.mrf.mxu1 }
 0x48f   : > { %v1428_v15 = vsel %vm655_vm2, %v1422_v14, -inf }
 0x490   : > { %1429 = vmax.xlane.f32.xlu2 %v1428_v15 }
 0x496   : > { %v1425_v16 = vpop.f32.mrf.mxu1 }
 0x497   : > { %v1431_v17 = vsel %vm655_vm2, %v1425_v16, -inf }
 0x498   : > { %1432 = vmax.xlane.f32.xlu0 %v1431_v17 }
 0x4a8   : > { %2295 = vrot.lane.b32.xlu2 %v2902_v51, %s2633_s28 }
 0x4a9   : > { %v1274_v26 = vpop.xlane.xlu0 %1273 }
 0x4aa   : > { %v1278_v18 = vsub.f32 %v1266_v8, %v1274_v26 }
 0x4ac   : > { %v1280_v19 = vmul.f32 1.442695, %v1278_v18 }
 0x4ae   : > { %2350 = vpow2.f32 %v1280_v19 }
 0x4b1   : > { %v1277_v23 = vpop.xlane.xlu1 %1276 }
 0x4b2   : > { %v1279_v28 = vsub.f32 %v1269_v10, %v1277_v23 }
 0x4b4   : > { %v2351_v21 = vpop.eup %2350  ;;  %v1282_v29 = vmul.f32 1.442695, %v1279_v28 }
 0x4b5   : > { %v1284_v22 = vsel %vm655_vm2, %v2351_v21, 0.0 }
 0x4b6   : > { %1285 = vadd.xlane.f32.xlu0 %v1284_v22  ;;  %2352 = vpow2.f32 %v1282_v29 }
 0x4bc   : > { %v2353_v33 = vpop.eup %2352 }
 0x4bd   : > { %v1287_v34 = vsel %vm655_vm2, %v2353_v33, 0.0 }
 0x4c9   : > { %v2301_v30 = vpop.permute.xlu1 %2300 }
 0x4ca   : > { %v2302_v31 = vunpack.i.l.bf16 %v2301_v30  ;;  %1707 = vrot.lane.b32.xlu0 %v2852_v25, %s2636_s29  ;;  %v2303_v32 = vunpack.i.h.bf16 %v2301_v30 }
 0x4cc   : > { %1502 = vmatpush.msrb.mxu2 %v2302_v31 }
 0x4ce   : > { %1503 = vmatpush.msrb.mxu2 %v2303_v32 }
 0x4d1   : > { %v1552_v35 = vpop.permute.xlu1 %1551  ;;  %1288 = vadd.xlane.f32.xlu2 %v1287_v34 }
 0x4d2   : > { %2140 = vmatpush.xpose.msk.msrb.mxu0 %vm619_vm1, %v1552_v35  ;;  %1545 = vrot.lane.b32.xlu0 %v2862_v27, %s2635_s15  ;;  %v1513_v27 = vld [vmem:[#allocation11 + $0x28] sm:$0xff] }
 0x4d9   : > { %v1550_v36 = vpop.permute.xlu1 %1549 }
 0x4da   : > { %2141 = vmatpush.xpose.msk.msrb.mxu0 %vm619_vm1, %v1550_v36 }
 0x4e1   : > { %v1706_v52 = vpop.permute.xlu1 %1705 }
 0x503   : > { %v1430_v37 = vpop.xlane.xlu2 %1429 }
 0x504   : > { %v1434_v38 = vsub.f32 %v1422_v14, %v1430_v37 }
 0x506   : > { %v1436_v39 = vmul.f32 1.442695, %v1434_v38 }
 0x508   : > { %2354 = vpow2.f32 %v1436_v39 }
 0x50b   : > { %v2296_v25 = vpop.permute.xlu2 %2295  ;;  %v1433_v40 = vpop.xlane.xlu0 %1432 }
 0x50c   : > { %v2297_v41 = vunpack.i.l.bf16 %v2296_v25  ;;  %v1435_v42 = vsub.f32 %v1425_v16, %v1433_v40  ;;  %v2298_v44 = vunpack.i.h.bf16 %v2296_v25 }
 0x50e   : > { %v2355_v43 = vpop.eup %2354  ;;  %v1438_v45 = vmul.f32 1.442695, %v1435_v42  ;;  %1346 = vmatpush.msra.mxu3 %v2297_v41 }
 0x50f   : > { %2136 = vmatmul.msk.f32.vlgmr.msrb.gmra.mxu2 %vm655_vm2, %v2355_v43  ;;  %v1440_v46 = vsel %vm655_vm2, %v2355_v43, 0.0 }
 0x510   : > { %2356 = vpow2.f32 %v1438_v45  ;;  %1347 = vmatpush.msra.mxu3 %v2298_v44  ;;  %1441 = vadd.xlane.f32.xlu0 %v1440_v46  ;;  %v1702_v45 = vpop.permute.xlu1 %1701 }
 0x511   : > { %2128 = vmatmul.msk.f32.vlgmr.msra.gmra.mxu3 %vm655_vm2, %v2351_v21 }
 0x512   : > { %1535 = vmatpush.msrb.mxu3 %v1513_v27 }
 0x516   : > { %v2357_v47 = vpop.eup %2356 }
 0x517   : > { %2137 = vmatmul.msk.f32.gmra.mxu2 %vm655_vm2, %v2357_v47  ;;  %v1443_v48 = vsel %vm655_vm2, %v2357_v47, 0.0 }
 0x518   : > { %1444 = vadd.xlane.f32.xlu0 %v1443_v48  ;;  %v1704_v46 = vpop.permute.xlu1 %1703 }
 0x519   : > { %2129 = vmatmul.msk.f32.gmra.mxu3 %vm655_vm2, %v2353_v33 }
 0x529   : > { %v1286_v49 = vpop.xlane.xlu0 %1285 }
 0x52a   : > { %2358 = vrcp.f32 %v1286_v49  ;;  %vm1295_vm10 = vweird.f32 %v1286_v49  ;;  %v1301_v6 = vand.u32 2147483648, %v1286_v49  ;;  %v1299_v9 = vand.u32 2147483647, %v1286_v49 }
 0x52c   : > { %1547 = vrot.lane.b32.xlu0 %v2850_v24, %s2635_s15  ;;  %v1302_v17 = vor.u32 1.1754944e-38, %v1301_v6  ;;  %vm1300_vm3 = vcmp.eq.f32.partialorder %v1299_v9, 8.507059e+37 }
 0x530   : > { %v2359_v57 = vpop.eup %2358 }
 0x531   : > { %v1291_v58 = vmul.f32 %v2359_v57, %v1286_v49  ;;  %vm1296_vm9 = vweird.f32 %v2359_v57 }
 0x532   : > { %vm3039_vm12 = vmor %vm1295_vm10, %vm1296_vm9 }
 0x533   : > { %v1292_v60 = vsub.f32 1.0, %v1291_v58 }
 0x535   : > { %v1293_v63 = vmul.f32 %v2359_v57, %v1292_v60 }
 0x537   : > { %v1294_v4 = vadd.f32 %v2359_v57, %v1293_v63 }
 0x539   : > { %v1298_v56 = vsel %vm3039_vm12, %v2359_v57, %v1294_v4 }
 0x53a   : > { %v1303_v20 = vsel %vm1300_vm3, %v1302_v17, %v1298_v56 }
 0x53c   : > { %v1708_v50 = vpop.permute.xlu0 %1707 }
 0x53d   : > { %2148 = vmatpush.xpose.msk.msra.mxu3 %vm619_vm1, %v1708_v50 }
 0x541   : > { %2149 = vmatpush.xpose.msk.msra.mxu3 %vm619_vm1, %v1706_v52 }
 0x544   : > { %v3030_v54 = vpop.permute.xlu0 %1545  ;;  %v3032_v55 = vpop.xlane.xlu2 %1288 }
 0x545   : > { %2360 = vrcp.f32 %v3032_v55  ;;  %vm1310_vm5 = vweird.f32 %v3032_v55  ;;  %v1316_v31 = vand.u32 2147483648, %v3032_v55  ;;  %v1314_v34 = vand.u32 2147483647, %v3032_v55 }
 0x547   : > { %v1317_v38 = vor.u32 1.1754944e-38, %v1316_v31 }
 0x54b   : > { %v3035_v24 = vpop.eup %2360 }
 0x54c   : > { %v1306_v62 = vmul.f32 %v3035_v24, %v3032_v55  ;;  %vm1311_vm4 = vweird.f32 %v3035_v24 }
 0x54d   : > { %vm1312_vm7 = vmor %vm1310_vm5, %vm1311_vm4 }
 0x54e   : > { %v1307_v2 = vsub.f32 1.0, %v1306_v62 }
 0x550   : > { %v1308_v12 = vmul.f32 %v3035_v24, %v1307_v2 }
 0x552   : > { %v1309_v29 = vadd.f32 %v3035_v24, %v1308_v12 }
 0x554   : > { %v1313_v36 = vsel %vm1312_vm7, %v3035_v24, %v1309_v29  ;;  %v1825_v29 = vld [vmem:[#allocation11 + $0x38] sm:$0xff] }
 0x583   : > { %v1442_v59 = vpop.xlane.xlu0 %1441 }
 0x584   : > { %2362 = vrcp.f32 %v1442_v59  ;;  %v1457_v5 = vand.u32 2147483648, %v1442_v59  ;;  %v1455_v8 = vand.u32 2147483647, %v1442_v59  ;;  %vm1451_vm13 = vweird.f32 %v1442_v59 }
 0x586   : > { %v1458_v15 = vor.u32 1.1754944e-38, %v1457_v5  ;;  %vm1456_vm15 = vcmp.eq.f32.partialorder %v1455_v8, 8.507059e+37 }
 0x58a   : > { %v2363_v0 = vpop.eup %2362 }
 0x58b   : > { %v1447_v53 = vmul.f32 %v2363_v0, %v1442_v59  ;;  %v1445_v1 = vpop.xlane.xlu0 %1444  ;;  %vm1452_vm11 = vweird.f32 %v2363_v0 }
 0x58c   : > { %2364 = vrcp.f32 %v1445_v1  ;;  %vm1453_vm14 = vmor %vm1451_vm13, %vm1452_vm11  ;;  %v1472_v30 = vand.u32 2147483648, %v1445_v1  ;;  %v1470_v33 = vand.u32 2147483647, %v1445_v1  ;;  %vm1466_vm8 = vweird.f32 %v1445_v1 }
 0x58d   : > { %v1448_v3 = vsub.f32 1.0, %v1447_v53  ;;  %vm1315_vm11 = vcmp.eq.f32.partialorder %v1314_v34, 8.507059e+37 }
 0x58e   : > { %v1473_v37 = vor.u32 1.1754944e-38, %v1472_v30  ;;  %vm1471_vm10 = vcmp.eq.f32.partialorder %v1470_v33, 8.507059e+37  ;;  %v1318_v41 = vsel %vm1315_vm11, %v1317_v38, %v1313_v36 }
 0x58f   : > { %v1449_v7 = vmul.f32 %v2363_v0, %v1448_v3 }
 0x591   : > { %v1450_v11 = vadd.f32 %v2363_v0, %v1449_v7 }
 0x592   : > { %v2365_v14 = vpop.eup %2364  ;;  %v1505_v16 = vpop.f32.mrf.mxu2 }
 0x593   : > { %v1462_v26 = vmul.f32 %v2365_v14, %v1445_v1  ;;  %v1454_v18 = vsel %vm1453_vm14, %v2363_v0, %v1450_v11  ;;  %vm1467_vm6 = vweird.f32 %v2365_v14 }
 0x594   : > { %v1459_v19 = vsel %vm1456_vm15, %v1458_v15, %v1454_v18  ;;  %v1349_v21 = vpop.f32.mrf.mxu3  ;;  %vm1468_vm9 = vmor %vm1466_vm8, %vm1467_vm6 }
 0x595   : > { %v1463_v22 = vsub.f32 1.0, %v1462_v26  ;;  %v1511_v23 = vmul.f32 %v1505_v16, %v1459_v19  ;;  %v1355_v28 = vmul.f32 %v1349_v21, %v1303_v20 }
 0x597   : > { %2130 = vmatmul.msk.f32.vlgmr.msra.gmra.mxu0 %vm619_vm1, %v1355_v28  ;;  %2138 = vmatmul.msk.f32.vlgmr.msrb.gmra.mxu3 %vm619_vm1, %v1511_v23  ;;  %v1464_v32 = vmul.f32 %v2365_v14, %v1463_v22  ;;  %v1669_v23 = vld [vmem:[#allocation11 + $0x30] sm:$0xff] }
 0x598   : > { %1691 = vmatpush.msra.mxu2 %v1669_v23 }
 0x599   : > { %v1465_v35 = vadd.f32 %v2365_v14, %v1464_v32 }
 0x59a   : > { %v1508_v40 = vpop.f32.mrf.mxu2 }
 0x59b   : > { %v1469_v39 = vsel %vm1468_vm9, %v2365_v14, %v1465_v35 }
 0x59c   : > { %v1474_v25 = vsel %vm1471_vm10, %v1473_v37, %v1469_v39  ;;  %v1352_v42 = vpop.f32.mrf.mxu3 }
 0x59d   : > { %v1512_v43 = vmul.f32 %v1508_v40, %v1474_v25  ;;  %v1356_v44 = vmul.f32 %v1352_v42, %v1318_v41 }
 0x59e   : > { %v1548_v27 = vpop.permute.xlu0 %1547 }
 0x59f   : > { %2131 = vmatmul.msk.f32.gmra.mxu0 %vm619_vm1, %v1356_v44  ;;  %2139 = vmatmul.msk.f32.gmra.mxu3 %vm619_vm1, %v1512_v43 }
 0x5a7   : > { %2142 = vmatmul.msk.f32.vlgmr.msrb.gmra.mxu0 %vm619_vm1, %v3030_v54  ;;  %2150 = vmatmul.msk.f32.vlgmr.msra.gmra.mxu3 %vm619_vm1, %v1702_v45 }
 0x5af   : > { %2143 = vmatmul.msk.f32.gmra.mxu0 %vm619_vm1, %v1548_v27  ;;  %2151 = vmatmul.msk.f32.gmra.mxu3 %vm619_vm1, %v1704_v46 }
 0x614   : > { %v1381_v47 = vpop.f32.mrf.mxu0 }
 0x615   : > { %v1387_v48 = vadd.f32 %v1381_v47, %v3002_v61 }
 0x61a   : > { %v1537_v49 = vpop.f32.mrf.mxu3 }
 0x61b   : > { %v3062_v50 = vadd.f32 %v1537_v49, %v1387_v48 }
 0x61c   : > { %v1384_v52 = vpop.f32.mrf.mxu0 }
 0x61d   : > { %v1388_v55 = vadd.f32 %v1384_v52, %v3006_v13 }
 0x622   : > { %v1540_v57 = vpop.f32.mrf.mxu3 }
 0x623   : > { %v3065_v58 = vadd.f32 %v1540_v57, %v1388_v55 }
 0x624   : > { %v1578_v54 = vpop.f32.mrf.mxu0 }
 0x625   : > { %v1584_v59 = vsel %vm655_vm2, %v1578_v54, -inf }
 0x626   : > { %1585 = vmax.xlane.f32.xlu2 %v1584_v59 }
 0x62a   : > { %v1734_v60 = vpop.f32.mrf.mxu3 }
 0x62b   : > { %v1740_v24 = vsel %vm655_vm2, %v1734_v60, -inf }
 0x62c   : > { %1741 = vmax.xlane.f32.xlu1 %v1740_v24  ;;  %v1581_v62 = vpop.f32.mrf.mxu0 }
 0x62d   : > { %v1587_v61 = vsel %vm655_vm2, %v1581_v62, -inf }
 0x62e   : > { %1588 = vmax.xlane.f32.xlu0 %v1587_v61 }
 0x632   : > { %v1737_v13 = vpop.f32.mrf.mxu3 }
 0x633   : > { %v1743_v63 = vsel %vm655_vm2, %v1737_v13, -inf }
 0x63e   : > { %2305 = vrot.lane.b32.xlu2 %v2902_v51, %s2635_s15 }
 0x642   : > { %2310 = vrot.lane.b32.xlu0 %v2902_v51, %s2636_s29 }
 0x667   : > { %1744 = vmax.xlane.f32.xlu2 %v1743_v63 }
 0x699   : > { %v1586_v0 = vpop.xlane.xlu2 %1585 }
 0x69a   : > { %v1590_v53 = vsub.f32 %v1578_v54, %v1586_v0 }
 0x69c   : > { %v1592_v1 = vmul.f32 1.442695, %v1590_v53 }
 0x69e   : > { %2366 = vpow2.f32 %v1592_v1 }
 0x69f   : > { %v1742_v2 = vpop.xlane.xlu1 %1741 }
 0x6a0   : > { %v1746_v8 = vsub.f32 %v1734_v60, %v1742_v2 }
 0x6a1   : > { %v2306_v3 = vpop.permute.xlu2 %2305  ;;  %v1589_v4 = vpop.xlane.xlu0 %1588 }
 0x6a2   : > { %v2307_v5 = vunpack.i.l.bf16 %v2306_v3  ;;  %v1591_v6 = vsub.f32 %v1581_v62, %v1589_v4  ;;  %v2308_v9 = vunpack.i.h.bf16 %v2306_v3  ;;  %v1748_v11 = vmul.f32 1.442695, %v1746_v8 }
 0x6a4   : > { %v2367_v7 = vpop.eup %2366  ;;  %v1594_v10 = vmul.f32 1.442695, %v1591_v6  ;;  %1658 = vmatpush.msrb.mxu1 %v2307_v5 }
 0x6a5   : > { %v1596_v51 = vsel %vm655_vm2, %v2367_v7, 0.0 }
 0x6a6   : > { %2368 = vpow2.f32 %v1594_v10  ;;  %1659 = vmatpush.msrb.mxu1 %v2308_v9  ;;  %1597 = vadd.xlane.f32.xlu1 %v1596_v51 }
 0x6a7   : > { %2144 = vmatmul.msk.f32.vlgmr.msrb.gmra.mxu1 %vm655_vm2, %v2367_v7  ;;  %2370 = vpow2.f32 %v1748_v11 }
 0x6a8   : > { %1847 = vmatpush.msra.mxu1 %v1825_v29 }
 0x6ac   : > { %v2369_v56 = vpop.eup %2368 }
 0x6ad   : > { %v1599_v12 = vsel %vm655_vm2, %v2369_v56, 0.0  ;;  %v2371_v14 = vpop.eup %2370 }
 0x6ae   : > { %1600 = vadd.xlane.f32.xlu1 %v1599_v12  ;;  %v1752_v17 = vsel %vm655_vm2, %v2371_v14, 0.0 }
 0x6af   : > { %2145 = vmatmul.msk.f32.gmra.mxu1 %vm655_vm2, %v2369_v56 }
 0x6b4   : > { %v2311_v15 = vpop.permute.xlu0 %2310 }
 0x6b5   : > { %v2312_v16 = vunpack.i.l.bf16 %v2311_v15  ;;  %v2313_v26 = vunpack.i.h.bf16 %v2311_v15 }
 0x6b6   : > { %1753 = vadd.xlane.f32.xlu1 %v1752_v17 }
 0x6b7   : > { %1814 = vmatpush.msra.mxu0 %v2312_v16 }
 0x6b9   : > { %1815 = vmatpush.msra.mxu0 %v2313_v26  ;;  %v2317_v26 = vld [vmem:[%s3144_s8] ss:$0 sm:$0xff] }
 0x6ba   : > { %2152 = vmatmul.msk.f32.vlgmr.msra.gmra.mxu0 %vm655_vm2, %v2371_v14 }
 0x6da   : > { %v1745_v18 = vpop.xlane.xlu2 %1744 }
 0x6db   : > { %v1747_v19 = vsub.f32 %v1737_v13, %v1745_v18 }
 0x6dd   : > { %v1750_v20 = vmul.f32 1.442695, %v1747_v19 }
 0x6df   : > { %2372 = vpow2.f32 %v1750_v20 }
 0x6e5   : > { %v2373_v21 = vpop.eup %2372 }
 0x6e6   : > { %2153 = vmatmul.msk.f32.gmra.mxu0 %vm655_vm2, %v2373_v21  ;;  %v1755_v22 = vsel %vm655_vm2, %v2373_v21, 0.0 }
 0x6e7   : > { %1756 = vadd.xlane.f32.xlu0 %v1755_v22 }
 0x719   : > { %v1598_v28 = vpop.xlane.xlu1 %1597 }
 0x71a   : > { %2374 = vrcp.f32 %v1598_v28  ;;  %v1613_v34 = vand.u32 2147483648, %v1598_v28  ;;  %v1611_v36 = vand.u32 2147483647, %v1598_v28  ;;  %vm1607_vm13 = vweird.f32 %v1598_v28 }
 0x71c   : > { %v1614_v39 = vor.u32 1.1754944e-38, %v1613_v34  ;;  %vm1612_vm14 = vcmp.eq.f32.partialorder %v1611_v36, 8.507059e+37 }
 0x720   : > { %v2375_v30 = vpop.eup %2374 }
 0x721   : > { %v1603_v31 = vmul.f32 %v2375_v30, %v1598_v28  ;;  %v1601_v32 = vpop.xlane.xlu1 %1600  ;;  %vm1608_vm12 = vweird.f32 %v2375_v30 }
 0x722   : > { %2376 = vrcp.f32 %v1601_v32  ;;  %vm1609_vm2 = vmor %vm1607_vm13, %vm1608_vm12  ;;  %v1628_v46 = vand.u32 2147483648, %v1601_v32  ;;  %v1626_v47 = vand.u32 2147483647, %v1601_v32  ;;  %vm1622_vm3 = vweird.f32 %v1601_v32 }
 0x723   : > { %v1604_v33 = vsub.f32 1.0, %v1603_v31 }
 0x724   : > { %v1661_v25 = vpop.f32.mrf.mxu1  ;;  %v1629_v52 = vor.u32 1.1754944e-38, %v1628_v46  ;;  %vm1627_vm5 = vcmp.eq.f32.partialorder %v1626_v47, 8.507059e+37 }
 0x725   : > { %v1605_v35 = vmul.f32 %v2375_v30, %v1604_v33 }
 0x727   : > { %v1606_v37 = vadd.f32 %v2375_v30, %v1605_v35 }
 0x728   : > { %v2377_v38 = vpop.eup %2376 }
 0x729   : > { %v1618_v40 = vmul.f32 %v2377_v38, %v1601_v32  ;;  %v1610_v41 = vsel %vm1609_vm2, %v2375_v30, %v1606_v37  ;;  %v1754_v42 = vpop.xlane.xlu1 %1753  ;;  %vm1623_vm15 = vweird.f32 %v2377_v38 }
 0x72a   : > { %v1615_v43 = vsel %vm1612_vm14, %v1614_v39, %v1610_v41  ;;  %2378 = vrcp.f32 %v1754_v42  ;;  %vm1624_vm4 = vmor %vm1622_vm3, %vm1623_vm15  ;;  %v1769_v62 = vand.u32 2147483648, %v1754_v42  ;;  %v1767_v13 = vand.u32 2147483647, %v1754_v42 }
 0x72b   : > { %v1619_v44 = vsub.f32 1.0, %v1618_v40  ;;  %v1667_v45 = vmul.f32 %v1661_v25, %v1615_v43  ;;  %vm1763_vm7 = vweird.f32 %v1754_v42 }
 0x72c   : > { %v1664_v59 = vpop.f32.mrf.mxu1  ;;  %v1770_v0 = vor.u32 1.1754944e-38, %v1769_v62  ;;  %vm1768_vm9 = vcmp.eq.f32.partialorder %v1767_v13, 8.507059e+37 }
 0x72d   : > { %v1620_v27 = vmul.f32 %v2377_v38, %v1619_v44  ;;  %2146 = vmatmul.msk.f32.vlgmr.msra.gmra.mxu2 %vm619_vm1, %v1667_v45 }
 0x72f   : > { %v1621_v48 = vadd.f32 %v2377_v38, %v1620_v27 }
 0x730   : > { %v2379_v49 = vpop.eup %2378 }
 0x731   : > { %v1759_v55 = vmul.f32 %v2379_v49, %v1754_v42  ;;  %v1625_v57 = vsel %vm1624_vm4, %v2377_v38, %v1621_v48  ;;  %vm1764_vm6 = vweird.f32 %v2379_v49 }
 0x732   : > { %v1630_v54 = vsel %vm1627_vm5, %v1629_v52, %v1625_v57  ;;  %vm1765_vm8 = vmor %vm1763_vm7, %vm1764_vm6 }
 0x733   : > { %v1760_v60 = vsub.f32 1.0, %v1759_v55  ;;  %v1668_v24 = vmul.f32 %v1664_v59, %v1630_v54 }
 0x735   : > { %v1761_v61 = vmul.f32 %v2379_v49, %v1760_v60  ;;  %2147 = vmatmul.msk.f32.gmra.mxu2 %vm619_vm1, %v1668_v24 }
 0x737   : > { %v1762_v63 = vadd.f32 %v2379_v49, %v1761_v61  ;;  %v1817_v2 = vpop.f32.mrf.mxu0 }
 0x739   : > { %v1766_v53 = vsel %vm1765_vm8, %v2379_v49, %v1762_v63 }
 0x73a   : > { %v1771_v1 = vsel %vm1768_vm9, %v1770_v0, %v1766_v53 }
 0x73b   : > { %v1823_v3 = vmul.f32 %v1817_v2, %v1771_v1 }
 0x73d   : > { %2154 = vmatmul.msk.f32.vlgmr.msra.gmra.mxu1 %vm619_vm1, %v1823_v3 }
 0x75a   : > { %v1757_v4 = vpop.xlane.xlu0 %1756 }
 0x75b   : > { %2380 = vrcp.f32 %v1757_v4  ;;  %v1784_v8 = vand.u32 2147483648, %v1757_v4  ;;  %v1782_v10 = vand.u32 2147483647, %v1757_v4  ;;  %vm1778_vm11 = vweird.f32 %v1757_v4 }
 0x75d   : > { %v1785_v11 = vor.u32 1.1754944e-38, %v1784_v8  ;;  %vm1783_vm13 = vcmp.eq.f32.partialorder %v1782_v10, 8.507059e+37 }
 0x761   : > { %v2381_v5 = vpop.eup %2380 }
 0x762   : > { %v1774_v6 = vmul.f32 %v2381_v5, %v1757_v4  ;;  %vm1779_vm10 = vweird.f32 %v2381_v5 }
 0x763   : > { %vm1780_vm12 = vmor %vm1778_vm11, %vm1779_vm10  ;;  %v1820_v14 = vpop.f32.mrf.mxu0 }
 0x764   : > { %v1775_v7 = vsub.f32 1.0, %v1774_v6 }
 0x766   : > { %v1776_v9 = vmul.f32 %v2381_v5, %v1775_v7 }
 0x768   : > { %v1777_v51 = vadd.f32 %v2381_v5, %v1776_v9 }
 0x76a   : > { %v1781_v56 = vsel %vm1780_vm12, %v2381_v5, %v1777_v51 }
 0x76b   : > { %v1786_v12 = vsel %vm1783_vm13, %v1785_v11, %v1781_v56 }
 0x76c   : > { %v1824_v15 = vmul.f32 %v1820_v14, %v1786_v12 }
 0x76e   : > { %2155 = vmatmul.msk.f32.gmra.mxu1 %vm619_vm1, %v1824_v15 }
 0x7b0   : > { %v1693_v16 = vpop.f32.mrf.mxu2 }
 0x7b1   : > { %v1699_v17 = vadd.f32 %v1693_v16, %v3062_v50 }
 0x7b8   : > { %v1696_v22 = vpop.f32.mrf.mxu2 }
 0x7b9   : > { %v1700_v23 = vadd.f32 %v1696_v22, %v3065_v58 }
 0x7ba   : > { %v1849_v18 = vpop.f32.mrf.mxu1 }
 0x7bb   : > { %v1855_v19 = vadd.f32 %v1849_v18, %v1699_v17 }
 0x7bd   : > { %v1865_v20 = vadd.f32 %v2317_v26, %v1855_v19 }
 0x7bf   : > { %1867 = vst.msk [vmem:[#allocation2] sm:$0xff] %vm519_vm0, %v1865_v20 }
 0x7c6   : > { %v1882_v21 = vld [vmem:[#allocation2] sm:$0xff] }
 0x7c7   : > { %1884 = vst.msk [vmem:[%s492_s2] sm:$0xff] %vm519_vm0, %v1882_v21 }
 0x7eb   : > { %v1852_v28 = vpop.f32.mrf.mxu1 }
 0x7ec   : > { %v1856_v50 = vadd.f32 %v1852_v28, %v1700_v23 }
 0x7ee   : > { %v1866_v29 = vadd.f32 %v2317_v26, %v1856_v50 }
 0x7f0   : > { %1868 = vst.msk [vmem:[#allocation2 + $0x8] sm:$0xff] %vm519_vm0, %v1866_v29 }
 0x7f7   : > { %v1883_v30 = vld [vmem:[#allocation2 + $0x8] sm:$0xff] }
 0x7f8   : > { %1885 = vst.msk [vmem:[%s492_s2 + $0x8] sm:$0xff] %vm519_vm0, %v1883_v30 }
 0x7f9   : > { %2559 = shalt.err (!%p2556_p0)
}
 0x7fa   : > { %s2637_s22 = smov 128   ;;  %s2638_s26 = smov 8  }
 0x7fb   : > { %2183 = dma.vmem_to_hbm [thread:$0]  (%p2795_p2), %s1900_s23, 256, %s1902_s16, %s1887_s20, %s2637_s22, %s2637_s22, %s2638_s26  }
 0x7fc PF: > { %s1916_s2 = sand.u32 1, %s2602_s30   ;;  %p2203_p4 = pnand %p2075_p10, %p2736_p5 }
 0x7fd   : > { %s1917_s3 = scalar_lea.sflag [#allocation5], %s1916_s2 }
 0x7fe   : > { %p2204_p6 = pneg %p2203_p4 }
 0x800   : > { %2597 = dma.done.wait (%p2204_p6), %s1917_s3, 256  }
 0x801   : > { %2599 = vsyncadd (%p2204_p6), %s1917_s3, 4294967040  ;;  %s27_s14 = sadd.s32 1, %s2622_s14   ;;  %s3173_s19 = sld [smem:[#allocation18_spill]] }
 0x802   : > { %p24_p8 = scmp.ge.s32.totalorder %s27_s14, 4   ;;  %s3174_s30 = smov %s2606_s10 }
 0x803   : > { %s3175_s10 = smov %s2610_s11  ;;  %s3176_s11 = smov %s2805_s21 }
 0x804   : > { %s3177_s12 = smov %s2618_s13  ;;  %26 = sbr.rel (!%p24_p8) target bundleno = 13 (0xd), region = 142 }
 0x807   : > { %s3178_s13 = smov %s3173_s19 }
 0x809   :  { %1923 = vsyncpa [#allocation4], 1 }
 0x80a   :  { %1925 = vsyncpa [#allocation4 + $0x1], 1 }
 0x80b   :  { %1926 = vsyncpa [#allocation7], 1 }
 0x80c   :  { %1927 = vsyncpa [#allocation10], 1 }
 0x80d   :  { %1928 = vsyncpa [#allocation5], 1 }
 0x80e   :  { %1930 = vsyncpa [#allocation5 + $0x1], 1 }

</bundles_post_ra>
